<compile_context>
chip_gen: v6e
topology: v6e:2x2x1
jax: 0.10.0
libtpu: 0.0.40
codegen_flags: <defaults>
</compile_context>

<pallas_src>
import math

import jax
import jax.numpy as jnp
from jax.experimental import pallas as pl
from jax.experimental.pallas import tpu as pltpu

BN_EPS = 1e-3          # BatchNorm2d(eps=0.001) in ConvModule
LN_EPS = 1e-5          # LayerNorm default eps in RountingFunction
PROPORTION = 40.0 / 180.0 * math.pi
COMPUTE_DTYPE = jnp.bfloat16   # MXU operand dtype (f32 accumulation/epilogue)


# ---------------------------------------------------------------------------
# Fused Pallas kernel (one invocation per sample; branches + taps unrolled)
# ---------------------------------------------------------------------------

def _make_msarc_kernel(mid, dim, H, Wpp, pad_v, dilations, chunk_rows):
    """Builds the kernel with all shape/offset constants baked in statically.

    Per grid step (one sample):
      x_ref    : (1, dim, Hp*Wpp) bf16   zero-padded input, flat padded spatial
      bsc/bbi  : (dim, 1) f32            folded per-branch BatchNorm affine
      fsc/fbi  : (dim, 1) f32            folded fusion BatchNorm affine
      warc_i   : (1, 9, cm_i, cm_i) bf16 per-sample rotated 3x3 weights
      wf_i     : (dim, cm_i) bf16        branch i's column block of fusion 1x1
      out_ref  : (1, dim, H*Wpp) f32
    """
    nb = len(mid)
    offs, s = [], 0
    for cm in mid:
        offs.append(s)
        s += cm

    chunks, h0 = [], 0
    while h0 < H:
        th = min(chunk_rows, H - h0)
        chunks.append((h0, th))
        h0 += th

    def kernel(*refs):
        x_ref, bsc_ref, bbi_ref, fsc_ref, fbi_ref = refs[:5]
        warc_refs = refs[5:5 + nb]
        wf_refs = refs[5 + nb:5 + 2 * nb]
        out_ref = refs[5 + 2 * nb]

        for (row0, th) in chunks:                      # static spatial chunks
            span = th * Wpp
            acc = None
            for i in range(nb):                        # unrolled branch loop
                cm = mid[i]
                c0 = offs[i]
                d = dilations[i]
                y = None
                for kh in range(3):                    # 9 shifted matmuls
                    for kw in range(3):
                        off = (pad_v + row0 + (kh - 1) * d) * Wpp + (kw - 1) * d
                        xs = x_ref[0, c0:c0 + cm, pl.ds(off, span)]   # bf16
                        wt = warc_refs[i][0, kh * 3 + kw]             # (cm,cm)
                        p = jnp.dot(wt, xs, preferred_element_type=jnp.float32)
                        y = p if y is None else y + p
                # branch BatchNorm (eval) + SiLU, all f32
                y = y * bsc_ref[c0:c0 + cm, :] + bbi_ref[c0:c0 + cm, :]
                y = y * jax.nn.sigmoid(y)
                # fusion 1x1 conv: accumulate this branch's channel block
                part = jnp.dot(wf_refs[i][...], y.astype(COMPUTE_DTYPE),
                               preferred_element_type=jnp.float32)
                acc = part if acc is None else acc + part

            z = acc * fsc_ref[...] + fbi_ref[...]      # fusion BN (eval)
            z = z * jax.nn.sigmoid(z)                  # SiLU
            # residual from the bf16 padded-x block already resident in VMEM
            res = x_ref[0, :, pl.ds((pad_v + row0) * Wpp, span)].astype(jnp.float32)
            out_ref[0, :, pl.ds(row0 * Wpp, span)] = (z + res).astype(out_ref.dtype)

    return kernel


def msarc_fused_call(x_pad_flat, bscale, bbias, fscale, fbias,
                     warc_list, wf_list, mid, dilations, H, Wpp, pad_v):
    B, C, HpWpp = x_pad_flat.shape
    dim = C
    nb = len(mid)
    HWo = H * Wpp
    chunk_rows = max(1, 2048 // Wpp)                   # bound live f32 temps

    kernel = _make_msarc_kernel(mid, dim, H, Wpp, pad_v, tuple(dilations),
                                chunk_rows)

    in_specs = [
        pl.BlockSpec((1, C, HpWpp), lambda b: (b, 0, 0)),
        pl.BlockSpec((dim, 1), lambda b: (0, 0)),
        pl.BlockSpec((dim, 1), lambda b: (0, 0)),
        pl.BlockSpec((dim, 1), lambda b: (0, 0)),
        pl.BlockSpec((dim, 1), lambda b: (0, 0)),
    ]
    for cm in mid:
        in_specs.append(pl.BlockSpec((1, 9, cm, cm), lambda b: (b, 0, 0, 0)))
    for cm in mid:
        in_specs.append(pl.BlockSpec((dim, cm), lambda b: (0, 0)))
    out_spec = pl.BlockSpec((1, dim, HWo), lambda b: (b, 0, 0))

    # --- VMEM budget (double-buffered inputs + output + f32 temps) ----------
    blk_bytes = (C * HpWpp * 2 + 4 * dim * 4
                 + sum(9 * cm * cm * 2 for cm in mid)
                 + sum(dim * cm * 2 for cm in mid))
    out_bytes = dim * HWo * 4
    temp_bytes = 3 * (dim + max(mid)) * chunk_rows * Wpp * 4
    vmem_needed = 2 * blk_bytes + 2 * out_bytes + temp_bytes + (1 << 20)
    vmem_limit = int(min(100 * 2**20, max(32 * 2**20, 2 * vmem_needed)))

    # --- cost estimate (helps XLA schedule the surrounding glue) ------------
    flops = int(2 * B * HWo * (9 * sum(cm * cm for cm in mid)
                               + sum(dim * cm for cm in mid)))
    transcendentals = int(B * HWo * (sum(mid) + dim))
    bytes_accessed = int(x_pad_flat.size * 2 + B * out_bytes
                         + sum(w.size * 2 for w in warc_list)
                         + sum(w.size * 2 for w in wf_list) + 4 * dim * 4)

    return pl.pallas_call(
        kernel,
        out_shape=jax.ShapeDtypeStruct((B, dim, HWo), jnp.float32),
        grid=(B,),
        in_specs=in_specs,
        out_specs=out_spec,
        compiler_params=pltpu.CompilerParams(
            dimension_semantics=("parallel",),
            vmem_limit_bytes=vmem_limit),
        cost_estimate=pl.CostEstimate(flops=flops,
                                      transcendentals=transcendentals,
                                      bytes_accessed=bytes_accessed),
    )(x_pad_flat, bscale, bbias, fscale, fbias, *warc_list, *wf_list)


# ---------------------------------------------------------------------------
# Plain-JAX glue (routing function, rotation matrices, params)
# ---------------------------------------------------------------------------

def _get_rotation_matrix(thetas):
    """thetas (b, n) -> (b, n, 9, 9) bilinear rotation matrices (3x3 kernels)."""
    b, n = thetas.shape
    t = thetas.reshape(-1)
    x = jnp.cos(t)
    y = jnp.sin(t)
    a = x - y
    bb = x * y
    c = x + y
    z = jnp.zeros_like(t)
    o = jnp.ones_like(t)

    def mat(rows):
        return jnp.stack([jnp.stack(r, 0) for r in rows], 0).transpose(2, 0, 1)

    pos = mat([
        [a, 1 - a, z, z, z, z, z, z, z],
        [z, x - bb, bb, z, 1 - c + bb, y - bb, z, z, z],
        [z, z, a, z, z, 1 - a, z, z, z],
        [bb, y - bb, z, x - bb, 1 - c + bb, z, z, z, z],
        [z, z, z, z, o, z, z, z, z],
        [z, z, z, z, 1 - c + bb, x - bb, z, y - bb, bb],
        [z, z, z, 1 - a, z, z, a, z, z],
        [z, z, z, y - bb, 1 - c + bb, z, bb, x - bb, z],
        [z, z, z, z, z, z, z, 1 - a, a],
    ])
    neg = mat([
        [c, z, z, 1 - c, z, z, z, z, z],
        [-bb, x + bb, z, bb - y, 1 - a - bb, z, z, z, z],
        [z, x + bb, bb - y, z, z, z, 1 - a - bb, -bb, z],
        [z, z, z, c, z, z, 1 - c, z, z],
        [z, z, z, z, o, z, z, z, z],
        [z, z, 1 - c, z, z, c, z, z, z],
        [z, -bb, 1 - a - bb, z, z, z, bb - y, x + bb, z],
        [z, z, z, z, 1 - a - bb, bb - y, z, x + bb, -bb],
        [z, z, z, z, z, 1 - c, z, z, c],
    ])
    mask = (t >= 0).astype(thetas.dtype)[:, None, None]
    rot = mask * pos + (1.0 - mask) * neg
    return rot.reshape(b, n, 9, 9)


def _batch_rotate_multiweight(weights, lambdas, thetas):
    """weights (n, Cout, Cin, 3, 3); lambdas/thetas (b, n) -> (b, 3, 3, Cout, Cin)."""
    b, n = thetas.shape
    _, cout, cin, _, _ = weights.shape
    rot = _get_rotation_matrix(thetas) * lambdas[:, :, None, None]   # (b,n,9,9)
    rot = jnp.transpose(rot, (0, 2, 1, 3)).reshape(b * 9, n * 9)
    wf = jnp.transpose(weights, (0, 3, 4, 1, 2)).reshape(n * 9, cout * cin)
    w = rot @ wf                                                     # (b*9, Cout*Cin)
    return w.reshape(b, 3, 3, cout, cin)


def init_msarc_params(key, dim, kernel_number=4, conv_num=3):
    mid = [dim // conv_num] * conv_num
    for k in range(dim % conv_num):
        mid[k] += 1
    n = kernel_number
    params = {"branches": []}
    for i in range(conv_num):
        cm = mid[i]
        ks = jax.random.split(jax.random.fold_in(key, i), 11)
        params["branches"].append(dict(
            dw=0.2 * jax.random.normal(ks[0], (9, 1, cm), jnp.float32),
            ln_g=1.0 + 0.1 * jax.random.normal(ks[1], (cm,), jnp.float32),
            ln_b=0.1 * jax.random.normal(ks[2], (cm,), jnp.float32),
            fc_a_w=0.3 * jax.random.normal(ks[3], (n, cm), jnp.float32),
            fc_a_b=0.1 * jax.random.normal(ks[4], (n,), jnp.float32),
            fc_t_w=0.3 * jax.random.normal(ks[5], (n, cm), jnp.float32),
            arc_w=0.2 * jax.random.normal(ks[6], (n, cm, cm, 3, 3), jnp.float32),
            bn_g=1.0 + 0.1 * jax.random.normal(ks[7], (cm,), jnp.float32),
            bn_b=0.1 * jax.random.normal(ks[8], (cm,), jnp.float32),
            bn_m=0.1 * jax.random.normal(ks[9], (cm,), jnp.float32),
            bn_v=1.0 + 0.1 * jnp.abs(jax.random.normal(ks[10], (cm,), jnp.float32)),
        ))
    ks = jax.random.split(jax.random.fold_in(key, 12345), 6)
    params["fusion"] = dict(
        w=(0.2 / math.sqrt(dim)) * jax.random.normal(ks[0], (dim, dim), jnp.float32),  # (Cin, Cout)
        conv_b=0.1 * jax.random.normal(ks[1], (dim,), jnp.float32),
        bn_g=1.0 + 0.1 * jax.random.normal(ks[2], (dim,), jnp.float32),
        bn_b=0.1 * jax.random.normal(ks[3], (dim,), jnp.float32),
        bn_m=0.1 * jax.random.normal(ks[4], (dim,), jnp.float32),
        bn_v=1.0 + 0.1 * jnp.abs(jax.random.normal(ks[5], (dim,), jnp.float32)),
    )
    return params


def msarc_forward(x_nchw, params, dilation=(1, 2, 3), padding=(1, 2, 3)):
    """MSARCModule.forward.  x_nchw: (B, dim, H, W) -> (B, dim, H, W)."""
    x = x_nchw.astype(jnp.float32)
    B, C, H, W = x.shape
    branches = params["branches"]
    conv_num = len(branches)
    mid = [C // conv_num] * conv_num
    for k in range(C % conv_num):
        mid[k] += 1
    for i in range(conv_num):
        # spatial size preserved only when padding == dilation for a 3x3 kernel
        assert padding[i] == dilation[i]

    # --- padded, flattened channels-first input for the kernel --------------
    P = max(dilation)
    pad_v = P + 1                       # +1 row: keeps all shifted flat windows
    col_l = P                           # in-bounds even for the max dilation
    Wpp = W + 2 * P
    limit = Wpp + max(8, Wpp // 4)      # bump Wpp for lane-dense stores (bounded waste)
    for cand in range(Wpp, limit + 1):
        if (H * cand) % 128 == 0:
            Wpp = cand
            break
    col_r = Wpp - col_l - W             # >= P, so zero-padding stays correct
    Hp = H + 2 * pad_v

    x_pad = jnp.pad(x, ((0, 0), (0, 0), (pad_v, pad_v), (col_l, col_r)))
    x_pad_flat = x_pad.reshape(B, C, Hp * Wpp).astype(COMPUTE_DTYPE)

    pf = params["fusion"]
    wf_oc_ic = pf["w"].T                                  # (Cout, Cin)

    bscale_list, bbias_list, warc_list, wf_list = [], [], [], []
    start = 0
    for i, cm in enumerate(mid):
        p = branches[i]
        xi = x[:, start:start + cm]                       # (B, cm, H, W)

        # --- RountingFunction (tiny: plain JAX) -----------------------------
        # avgpool(depthwise3x3(x)) == sum_t dw_t * mean_hw(window_t) (linear).
        xp1 = jnp.pad(xi, ((0, 0), (0, 0), (1, 1), (1, 1)))
        tap_means = jnp.stack(
            [jnp.mean(xp1[:, :, kh:kh + H, kw:kw + W], axis=(2, 3))
             for kh in range(3) for kw in range(3)], axis=1)          # (B, 9, cm)
        pooled = jnp.sum(tap_means * p["dw"][None, :, 0, :], axis=1)  # (B, cm)
        mu = jnp.mean(pooled, axis=-1, keepdims=True)
        var = jnp.mean((pooled - mu) ** 2, axis=-1, keepdims=True)
        h = (pooled - mu) / jnp.sqrt(var + LN_EPS) * p["ln_g"] + p["ln_b"]
        h = jax.nn.relu(h)
        alphas = jax.nn.sigmoid(h @ p["fc_a_w"].T + p["fc_a_b"])      # (B, n)
        ang = h @ p["fc_t_w"].T
        thetas = (ang / (1.0 + jnp.abs(ang))) * PROPORTION            # softsign

        # --- rotate & gate base kernels -> per-sample per-tap weights -------
        wrot = _batch_rotate_multiweight(p["arc_w"], alphas, thetas)  # (B,3,3,co,ci)
        warc_list.append(wrot.reshape(B, 9, cm, cm).astype(COMPUTE_DTYPE))

        # --- folded BatchNorm (eval) affine ----------------------------------
        scale = p["bn_g"] / jnp.sqrt(p["bn_v"] + BN_EPS)
        bias = p["bn_b"] - p["bn_m"] * scale
        bscale_list.append(scale)
        bbias_list.append(bias)

        # --- this branch's column block of the fusion 1x1 weight ------------
        wf_list.append(wf_oc_ic[:, start:start + cm].astype(COMPUTE_DTYPE))
        start += cm

    bscale = jnp.concatenate(bscale_list)[:, None]                    # (dim, 1)
    bbias = jnp.concatenate(bbias_list)[:, None]
    f_scale = pf["bn_g"] / jnp.sqrt(pf["bn_v"] + BN_EPS)
    f_bias = pf["bn_b"] + (pf["conv_b"] - pf["bn_m"]) * f_scale       # conv bias folded
    f_scale = f_scale[:, None]
    f_bias = f_bias[:, None]

    out_ext = msarc_fused_call(x_pad_flat, bscale, bbias, f_scale, f_bias,
                               warc_list, wf_list, mid, dilation, H, Wpp, pad_v)
    # crop the extended columns back to the true spatial grid
    out = out_ext.reshape(B, C, H, Wpp)[:, :, :, col_l:col_l + W]
    return out                                                        # NCHW f32


if __name__ == "__main__":
    B, dim, H, W = 2, 12, 16, 16
    # dilation == padding so each branch preserves spatial size (required for
    # the channel-wise concatenation in the reference forward).
    dilation = (1, 2, 3)
    padding = (1, 2, 3)

    key = jax.random.PRNGKey(0)
    kx, kp = jax.random.split(key)
    x = jax.random.normal(kx, (B, dim, H, W), jnp.float32)
    params = init_msarc_params(kp, dim, kernel_number=4, conv_num=3)

    fwd = jax.jit(lambda inp: msarc_forward(inp, params, dilation, padding))
    out = jax.block_until_ready(fwd(x))

    assert out.shape == (B, dim, H, W)
    assert bool(jnp.all(jnp.isfinite(out)))
    print("KERNEL_OK")
</pallas_src>

<mosaic_0001>
module attributes {stable_mosaic.version = 11 : i64} {
  func.func @kernel(%arg0: i32, %arg1: memref<1x12x576xbf16, #tpu.memory_space<vmem>>, %arg2: memref<12x1xf32, #tpu.memory_space<vmem>>, %arg3: memref<12x1xf32, #tpu.memory_space<vmem>>, %arg4: memref<12x1xf32, #tpu.memory_space<vmem>>, %arg5: memref<12x1xf32, #tpu.memory_space<vmem>>, %arg6: memref<1x9x4x4xbf16, #tpu.memory_space<vmem>>, %arg7: memref<1x9x4x4xbf16, #tpu.memory_space<vmem>>, %arg8: memref<1x9x4x4xbf16, #tpu.memory_space<vmem>>, %arg9: memref<12x4xbf16, #tpu.memory_space<vmem>>, %arg10: memref<12x4xbf16, #tpu.memory_space<vmem>>, %arg11: memref<12x4xbf16, #tpu.memory_space<vmem>>, %arg12: memref<1x12x384xf32, #tpu.memory_space<vmem>>) attributes {dimension_semantics = [#tpu.dimension_semantics<parallel>], iteration_bounds = array<i64: 2>, scalar_prefetch = 0 : i64, scratch_operands = 0 : i64, tpu.core_type = #tpu.core_type<tc>, window_params = [{transform_indices = @transform_0, window_bounds = array<i64: 1, 12, 576>}, {pipeline_mode = #tpu.pipeline_mode<synchronous>, transform_indices = @transform_1, window_bounds = array<i64: 12, 1>}, {pipeline_mode = #tpu.pipeline_mode<synchronous>, transform_indices = @transform_2, window_bounds = array<i64: 12, 1>}, {pipeline_mode = #tpu.pipeline_mode<synchronous>, transform_indices = @transform_3, window_bounds = array<i64: 12, 1>}, {pipeline_mode = #tpu.pipeline_mode<synchronous>, transform_indices = @transform_4, window_bounds = array<i64: 12, 1>}, {transform_indices = @transform_5, window_bounds = array<i64: 1, 9, 4, 4>}, {transform_indices = @transform_6, window_bounds = array<i64: 1, 9, 4, 4>}, {transform_indices = @transform_7, window_bounds = array<i64: 1, 9, 4, 4>}, {pipeline_mode = #tpu.pipeline_mode<synchronous>, transform_indices = @transform_8, window_bounds = array<i64: 12, 4>}, {pipeline_mode = #tpu.pipeline_mode<synchronous>, transform_indices = @transform_9, window_bounds = array<i64: 12, 4>}, {pipeline_mode = #tpu.pipeline_mode<synchronous>, transform_indices = @transform_10, window_bounds = array<i64: 12, 4>}, {transform_indices = @transform_11, window_bounds = array<i64: 1, 12, 384>}]} {
    %c0 = arith.constant 0 : index
    %c0_0 = arith.constant 0 : index
    %c71 = arith.constant 71 : index
    %0 = vector.load %arg1[%c0, %c0_0, %c71] : memref<1x12x576xbf16, #tpu.memory_space<vmem>>, vector<1x4x384xbf16>
    %1 = vector.shape_cast %0 : vector<1x4x384xbf16> to vector<4x384xbf16>
    %c0_1 = arith.constant 0 : index
    %c0_2 = arith.constant 0 : index
    %c0_3 = arith.constant 0 : index
    %c0_4 = arith.constant 0 : index
    %2 = vector.load %arg6[%c0_1, %c0_2, %c0_3, %c0_4] : memref<1x9x4x4xbf16, #tpu.memory_space<vmem>>, vector<1x1x4x4xbf16>
    %3 = vector.shape_cast %2 : vector<1x1x4x4xbf16> to vector<4x4xbf16>
    %cst = arith.constant dense<0.000000e+00> : vector<4x384xf32>
    %4 = tpu.matmul %3, %1, %cst {dimension_numbers = #tpu.dot_dimension_numbers<[1], [0], [0], [1], [0, 0, 1, 1], [], []>} : vector<4x4xbf16>, vector<4x384xbf16>, vector<4x384xf32> -> vector<4x384xf32>
    %c0_5 = arith.constant 0 : index
    %c0_6 = arith.constant 0 : index
    %c72 = arith.constant 72 : index
    %5 = vector.load %arg1[%c0_5, %c0_6, %c72] : memref<1x12x576xbf16, #tpu.memory_space<vmem>>, vector<1x4x384xbf16>
    %6 = vector.shape_cast %5 : vector<1x4x384xbf16> to vector<4x384xbf16>
    %c0_7 = arith.constant 0 : index
    %c1 = arith.constant 1 : index
    %c0_8 = arith.constant 0 : index
    %c0_9 = arith.constant 0 : index
    %7 = vector.load %arg6[%c0_7, %c1, %c0_8, %c0_9] : memref<1x9x4x4xbf16, #tpu.memory_space<vmem>>, vector<1x1x4x4xbf16>
    %8 = vector.shape_cast %7 : vector<1x1x4x4xbf16> to vector<4x4xbf16>
    %cst_10 = arith.constant dense<0.000000e+00> : vector<4x384xf32>
    %9 = tpu.matmul %8, %6, %cst_10 {dimension_numbers = #tpu.dot_dimension_numbers<[1], [0], [0], [1], [0, 0, 1, 1], [], []>} : vector<4x4xbf16>, vector<4x384xbf16>, vector<4x384xf32> -> vector<4x384xf32>
    %10 = arith.addf %4, %9 : vector<4x384xf32>
    %c0_11 = arith.constant 0 : index
    %c0_12 = arith.constant 0 : index
    %c73 = arith.constant 73 : index
    %11 = vector.load %arg1[%c0_11, %c0_12, %c73] : memref<1x12x576xbf16, #tpu.memory_space<vmem>>, vector<1x4x384xbf16>
    %12 = vector.shape_cast %11 : vector<1x4x384xbf16> to vector<4x384xbf16>
    %c0_13 = arith.constant 0 : index
    %c2 = arith.constant 2 : index
    %c0_14 = arith.constant 0 : index
    %c0_15 = arith.constant 0 : index
    %13 = vector.load %arg6[%c0_13, %c2, %c0_14, %c0_15] : memref<1x9x4x4xbf16, #tpu.memory_space<vmem>>, vector<1x1x4x4xbf16>
    %14 = vector.shape_cast %13 : vector<1x1x4x4xbf16> to vector<4x4xbf16>
    %cst_16 = arith.constant dense<0.000000e+00> : vector<4x384xf32>
    %15 = tpu.matmul %14, %12, %cst_16 {dimension_numbers = #tpu.dot_dimension_numbers<[1], [0], [0], [1], [0, 0, 1, 1], [], []>} : vector<4x4xbf16>, vector<4x384xbf16>, vector<4x384xf32> -> vector<4x384xf32>
    %16 = arith.addf %10, %15 : vector<4x384xf32>
    %c0_17 = arith.constant 0 : index
    %c0_18 = arith.constant 0 : index
    %c95 = arith.constant 95 : index
    %17 = vector.load %arg1[%c0_17, %c0_18, %c95] : memref<1x12x576xbf16, #tpu.memory_space<vmem>>, vector<1x4x384xbf16>
    %18 = vector.shape_cast %17 : vector<1x4x384xbf16> to vector<4x384xbf16>
    %c0_19 = arith.constant 0 : index
    %c3 = arith.constant 3 : index
    %c0_20 = arith.constant 0 : index
    %c0_21 = arith.constant 0 : index
    %19 = vector.load %arg6[%c0_19, %c3, %c0_20, %c0_21] : memref<1x9x4x4xbf16, #tpu.memory_space<vmem>>, vector<1x1x4x4xbf16>
    %20 = vector.shape_cast %19 : vector<1x1x4x4xbf16> to vector<4x4xbf16>
    %cst_22 = arith.constant dense<0.000000e+00> : vector<4x384xf32>
    %21 = tpu.matmul %20, %18, %cst_22 {dimension_numbers = #tpu.dot_dimension_numbers<[1], [0], [0], [1], [0, 0, 1, 1], [], []>} : vector<4x4xbf16>, vector<4x384xbf16>, vector<4x384xf32> -> vector<4x384xf32>
    %22 = arith.addf %16, %21 : vector<4x384xf32>
    %c0_23 = arith.constant 0 : index
    %c0_24 = arith.constant 0 : index
    %c96 = arith.constant 96 : index
    %23 = vector.load %arg1[%c0_23, %c0_24, %c96] : memref<1x12x576xbf16, #tpu.memory_space<vmem>>, vector<1x4x384xbf16>
    %24 = vector.shape_cast %23 : vector<1x4x384xbf16> to vector<4x384xbf16>
    %c0_25 = arith.constant 0 : index
    %c4 = arith.constant 4 : index
    %c0_26 = arith.constant 0 : index
    %c0_27 = arith.constant 0 : index
    %25 = vector.load %arg6[%c0_25, %c4, %c0_26, %c0_27] : memref<1x9x4x4xbf16, #tpu.memory_space<vmem>>, vector<1x1x4x4xbf16>
    %26 = vector.shape_cast %25 : vector<1x1x4x4xbf16> to vector<4x4xbf16>
    %cst_28 = arith.constant dense<0.000000e+00> : vector<4x384xf32>
    %27 = tpu.matmul %26, %24, %cst_28 {dimension_numbers = #tpu.dot_dimension_numbers<[1], [0], [0], [1], [0, 0, 1, 1], [], []>} : vector<4x4xbf16>, vector<4x384xbf16>, vector<4x384xf32> -> vector<4x384xf32>
    %28 = arith.addf %22, %27 : vector<4x384xf32>
    %c0_29 = arith.constant 0 : index
    %c0_30 = arith.constant 0 : index
    %c97 = arith.constant 97 : index
    %29 = vector.load %arg1[%c0_29, %c0_30, %c97] : memref<1x12x576xbf16, #tpu.memory_space<vmem>>, vector<1x4x384xbf16>
    %30 = vector.shape_cast %29 : vector<1x4x384xbf16> to vector<4x384xbf16>
    %c0_31 = arith.constant 0 : index
    %c5 = arith.constant 5 : index
    %c0_32 = arith.constant 0 : index
    %c0_33 = arith.constant 0 : index
    %31 = vector.load %arg6[%c0_31, %c5, %c0_32, %c0_33] : memref<1x9x4x4xbf16, #tpu.memory_space<vmem>>, vector<1x1x4x4xbf16>
    %32 = vector.shape_cast %31 : vector<1x1x4x4xbf16> to vector<4x4xbf16>
    %cst_34 = arith.constant dense<0.000000e+00> : vector<4x384xf32>
    %33 = tpu.matmul %32, %30, %cst_34 {dimension_numbers = #tpu.dot_dimension_numbers<[1], [0], [0], [1], [0, 0, 1, 1], [], []>} : vector<4x4xbf16>, vector<4x384xbf16>, vector<4x384xf32> -> vector<4x384xf32>
    %34 = arith.addf %28, %33 : vector<4x384xf32>
    %c0_35 = arith.constant 0 : index
    %c0_36 = arith.constant 0 : index
    %c119 = arith.constant 119 : index
    %35 = vector.load %arg1[%c0_35, %c0_36, %c119] : memref<1x12x576xbf16, #tpu.memory_space<vmem>>, vector<1x4x384xbf16>
    %36 = vector.shape_cast %35 : vector<1x4x384xbf16> to vector<4x384xbf16>
    %c0_37 = arith.constant 0 : index
    %c6 = arith.constant 6 : index
    %c0_38 = arith.constant 0 : index
    %c0_39 = arith.constant 0 : index
    %37 = vector.load %arg6[%c0_37, %c6, %c0_38, %c0_39] : memref<1x9x4x4xbf16, #tpu.memory_space<vmem>>, vector<1x1x4x4xbf16>
    %38 = vector.shape_cast %37 : vector<1x1x4x4xbf16> to vector<4x4xbf16>
    %cst_40 = arith.constant dense<0.000000e+00> : vector<4x384xf32>
    %39 = tpu.matmul %38, %36, %cst_40 {dimension_numbers = #tpu.dot_dimension_numbers<[1], [0], [0], [1], [0, 0, 1, 1], [], []>} : vector<4x4xbf16>, vector<4x384xbf16>, vector<4x384xf32> -> vector<4x384xf32>
    %40 = arith.addf %34, %39 : vector<4x384xf32>
    %c0_41 = arith.constant 0 : index
    %c0_42 = arith.constant 0 : index
    %c120 = arith.constant 120 : index
    %41 = vector.load %arg1[%c0_41, %c0_42, %c120] : memref<1x12x576xbf16, #tpu.memory_space<vmem>>, vector<1x4x384xbf16>
    %42 = vector.shape_cast %41 : vector<1x4x384xbf16> to vector<4x384xbf16>
    %c0_43 = arith.constant 0 : index
    %c7 = arith.constant 7 : index
    %c0_44 = arith.constant 0 : index
    %c0_45 = arith.constant 0 : index
    %43 = vector.load %arg6[%c0_43, %c7, %c0_44, %c0_45] : memref<1x9x4x4xbf16, #tpu.memory_space<vmem>>, vector<1x1x4x4xbf16>
    %44 = vector.shape_cast %43 : vector<1x1x4x4xbf16> to vector<4x4xbf16>
    %cst_46 = arith.constant dense<0.000000e+00> : vector<4x384xf32>
    %45 = tpu.matmul %44, %42, %cst_46 {dimension_numbers = #tpu.dot_dimension_numbers<[1], [0], [0], [1], [0, 0, 1, 1], [], []>} : vector<4x4xbf16>, vector<4x384xbf16>, vector<4x384xf32> -> vector<4x384xf32>
    %46 = arith.addf %40, %45 : vector<4x384xf32>
    %c0_47 = arith.constant 0 : index
    %c0_48 = arith.constant 0 : index
    %c121 = arith.constant 121 : index
    %47 = vector.load %arg1[%c0_47, %c0_48, %c121] : memref<1x12x576xbf16, #tpu.memory_space<vmem>>, vector<1x4x384xbf16>
    %48 = vector.shape_cast %47 : vector<1x4x384xbf16> to vector<4x384xbf16>
    %c0_49 = arith.constant 0 : index
    %c8 = arith.constant 8 : index
    %c0_50 = arith.constant 0 : index
    %c0_51 = arith.constant 0 : index
    %49 = vector.load %arg6[%c0_49, %c8, %c0_50, %c0_51] : memref<1x9x4x4xbf16, #tpu.memory_space<vmem>>, vector<1x1x4x4xbf16>
    %50 = vector.shape_cast %49 : vector<1x1x4x4xbf16> to vector<4x4xbf16>
    %cst_52 = arith.constant dense<0.000000e+00> : vector<4x384xf32>
    %51 = tpu.matmul %50, %48, %cst_52 {dimension_numbers = #tpu.dot_dimension_numbers<[1], [0], [0], [1], [0, 0, 1, 1], [], []>} : vector<4x4xbf16>, vector<4x384xbf16>, vector<4x384xf32> -> vector<4x384xf32>
    %52 = arith.addf %46, %51 : vector<4x384xf32>
    %c0_53 = arith.constant 0 : index
    %c0_54 = arith.constant 0 : index
    %53 = vector.load %arg2[%c0_53, %c0_54] : memref<12x1xf32, #tpu.memory_space<vmem>>, vector<4x1xf32>
    %54 = vector.broadcast %53 : vector<4x1xf32> to vector<4x384xf32>
    %55 = arith.mulf %52, %54 : vector<4x384xf32>
    %c0_55 = arith.constant 0 : index
    %c0_56 = arith.constant 0 : index
    %56 = vector.load %arg3[%c0_55, %c0_56] : memref<12x1xf32, #tpu.memory_space<vmem>>, vector<4x1xf32>
    %57 = vector.broadcast %56 : vector<4x1xf32> to vector<4x384xf32>
    %58 = arith.addf %55, %57 : vector<4x384xf32>
    %59 = arith.negf %58 : vector<4x384xf32>
    %60 = math.exp %59 : vector<4x384xf32>
    %cst_57 = arith.constant 1.000000e+00 : f32
    %61 = vector.broadcast %cst_57 : f32 to vector<4x384xf32>
    %62 = arith.addf %61, %60 : vector<4x384xf32>
    %63 = arith.divf %61, %62 : vector<4x384xf32>
    %64 = arith.mulf %58, %63 : vector<4x384xf32>
    %c0_58 = arith.constant 0 : index
    %c0_59 = arith.constant 0 : index
    %65 = vector.load %arg9[%c0_58, %c0_59] : memref<12x4xbf16, #tpu.memory_space<vmem>>, vector<12x4xbf16>
    %66 = arith.truncf %64 : vector<4x384xf32> to vector<4x384xbf16>
    %cst_60 = arith.constant dense<0.000000e+00> : vector<12x384xf32>
    %67 = tpu.matmul %65, %66, %cst_60 {dimension_numbers = #tpu.dot_dimension_numbers<[1], [0], [0], [1], [0, 0, 1, 1], [], []>} : vector<12x4xbf16>, vector<4x384xbf16>, vector<12x384xf32> -> vector<12x384xf32>
    %c0_61 = arith.constant 0 : index
    %c4_62 = arith.constant 4 : index
    %c46 = arith.constant 46 : index
    %68 = vector.load %arg1[%c0_61, %c4_62, %c46] : memref<1x12x576xbf16, #tpu.memory_space<vmem>>, vector<1x4x384xbf16>
    %69 = vector.shape_cast %68 : vector<1x4x384xbf16> to vector<4x384xbf16>
    %c0_63 = arith.constant 0 : index
    %c0_64 = arith.constant 0 : index
    %c0_65 = arith.constant 0 : index
    %c0_66 = arith.constant 0 : index
    %70 = vector.load %arg7[%c0_63, %c0_64, %c0_65, %c0_66] : memref<1x9x4x4xbf16, #tpu.memory_space<vmem>>, vector<1x1x4x4xbf16>
    %71 = vector.shape_cast %70 : vector<1x1x4x4xbf16> to vector<4x4xbf16>
    %cst_67 = arith.constant dense<0.000000e+00> : vector<4x384xf32>
    %72 = tpu.matmul %71, %69, %cst_67 {dimension_numbers = #tpu.dot_dimension_numbers<[1], [0], [0], [1], [0, 0, 1, 1], [], []>} : vector<4x4xbf16>, vector<4x384xbf16>, vector<4x384xf32> -> vector<4x384xf32>
    %c0_68 = arith.constant 0 : index
    %c4_69 = arith.constant 4 : index
    %c48 = arith.constant 48 : index
    %73 = vector.load %arg1[%c0_68, %c4_69, %c48] : memref<1x12x576xbf16, #tpu.memory_space<vmem>>, vector<1x4x384xbf16>
    %74 = vector.shape_cast %73 : vector<1x4x384xbf16> to vector<4x384xbf16>
    %c0_70 = arith.constant 0 : index
    %c1_71 = arith.constant 1 : index
    %c0_72 = arith.constant 0 : index
    %c0_73 = arith.constant 0 : index
    %75 = vector.load %arg7[%c0_70, %c1_71, %c0_72, %c0_73] : memref<1x9x4x4xbf16, #tpu.memory_space<vmem>>, vector<1x1x4x4xbf16>
    %76 = vector.shape_cast %75 : vector<1x1x4x4xbf16> to vector<4x4xbf16>
    %cst_74 = arith.constant dense<0.000000e+00> : vector<4x384xf32>
    %77 = tpu.matmul %76, %74, %cst_74 {dimension_numbers = #tpu.dot_dimension_numbers<[1], [0], [0], [1], [0, 0, 1, 1], [], []>} : vector<4x4xbf16>, vector<4x384xbf16>, vector<4x384xf32> -> vector<4x384xf32>
    %78 = arith.addf %72, %77 : vector<4x384xf32>
    %c0_75 = arith.constant 0 : index
    %c4_76 = arith.constant 4 : index
    %c50 = arith.constant 50 : index
    %79 = vector.load %arg1[%c0_75, %c4_76, %c50] : memref<1x12x576xbf16, #tpu.memory_space<vmem>>, vector<1x4x384xbf16>
    %80 = vector.shape_cast %79 : vector<1x4x384xbf16> to vector<4x384xbf16>
    %c0_77 = arith.constant 0 : index
    %c2_78 = arith.constant 2 : index
    %c0_79 = arith.constant 0 : index
    %c0_80 = arith.constant 0 : index
    %81 = vector.load %arg7[%c0_77, %c2_78, %c0_79, %c0_80] : memref<1x9x4x4xbf16, #tpu.memory_space<vmem>>, vector<1x1x4x4xbf16>
    %82 = vector.shape_cast %81 : vector<1x1x4x4xbf16> to vector<4x4xbf16>
    %cst_81 = arith.constant dense<0.000000e+00> : vector<4x384xf32>
    %83 = tpu.matmul %82, %80, %cst_81 {dimension_numbers = #tpu.dot_dimension_numbers<[1], [0], [0], [1], [0, 0, 1, 1], [], []>} : vector<4x4xbf16>, vector<4x384xbf16>, vector<4x384xf32> -> vector<4x384xf32>
    %84 = arith.addf %78, %83 : vector<4x384xf32>
    %c0_82 = arith.constant 0 : index
    %c4_83 = arith.constant 4 : index
    %c94 = arith.constant 94 : index
    %85 = vector.load %arg1[%c0_82, %c4_83, %c94] : memref<1x12x576xbf16, #tpu.memory_space<vmem>>, vector<1x4x384xbf16>
    %86 = vector.shape_cast %85 : vector<1x4x384xbf16> to vector<4x384xbf16>
    %c0_84 = arith.constant 0 : index
    %c3_85 = arith.constant 3 : index
    %c0_86 = arith.constant 0 : index
    %c0_87 = arith.constant 0 : index
    %87 = vector.load %arg7[%c0_84, %c3_85, %c0_86, %c0_87] : memref<1x9x4x4xbf16, #tpu.memory_space<vmem>>, vector<1x1x4x4xbf16>
    %88 = vector.shape_cast %87 : vector<1x1x4x4xbf16> to vector<4x4xbf16>
    %cst_88 = arith.constant dense<0.000000e+00> : vector<4x384xf32>
    %89 = tpu.matmul %88, %86, %cst_88 {dimension_numbers = #tpu.dot_dimension_numbers<[1], [0], [0], [1], [0, 0, 1, 1], [], []>} : vector<4x4xbf16>, vector<4x384xbf16>, vector<4x384xf32> -> vector<4x384xf32>
    %90 = arith.addf %84, %89 : vector<4x384xf32>
    %c0_89 = arith.constant 0 : index
    %c4_90 = arith.constant 4 : index
    %c96_91 = arith.constant 96 : index
    %91 = vector.load %arg1[%c0_89, %c4_90, %c96_91] : memref<1x12x576xbf16, #tpu.memory_space<vmem>>, vector<1x4x384xbf16>
    %92 = vector.shape_cast %91 : vector<1x4x384xbf16> to vector<4x384xbf16>
    %c0_92 = arith.constant 0 : index
    %c4_93 = arith.constant 4 : index
    %c0_94 = arith.constant 0 : index
    %c0_95 = arith.constant 0 : index
    %93 = vector.load %arg7[%c0_92, %c4_93, %c0_94, %c0_95] : memref<1x9x4x4xbf16, #tpu.memory_space<vmem>>, vector<1x1x4x4xbf16>
    %94 = vector.shape_cast %93 : vector<1x1x4x4xbf16> to vector<4x4xbf16>
    %cst_96 = arith.constant dense<0.000000e+00> : vector<4x384xf32>
    %95 = tpu.matmul %94, %92, %cst_96 {dimension_numbers = #tpu.dot_dimension_numbers<[1], [0], [0], [1], [0, 0, 1, 1], [], []>} : vector<4x4xbf16>, vector<4x384xbf16>, vector<4x384xf32> -> vector<4x384xf32>
    %96 = arith.addf %90, %95 : vector<4x384xf32>
    %c0_97 = arith.constant 0 : index
    %c4_98 = arith.constant 4 : index
    %c98 = arith.constant 98 : index
    %97 = vector.load %arg1[%c0_97, %c4_98, %c98] : memref<1x12x576xbf16, #tpu.memory_space<vmem>>, vector<1x4x384xbf16>
    %98 = vector.shape_cast %97 : vector<1x4x384xbf16> to vector<4x384xbf16>
    %c0_99 = arith.constant 0 : index
    %c5_100 = arith.constant 5 : index
    %c0_101 = arith.constant 0 : index
    %c0_102 = arith.constant 0 : index
    %99 = vector.load %arg7[%c0_99, %c5_100, %c0_101, %c0_102] : memref<1x9x4x4xbf16, #tpu.memory_space<vmem>>, vector<1x1x4x4xbf16>
    %100 = vector.shape_cast %99 : vector<1x1x4x4xbf16> to vector<4x4xbf16>
    %cst_103 = arith.constant dense<0.000000e+00> : vector<4x384xf32>
    %101 = tpu.matmul %100, %98, %cst_103 {dimension_numbers = #tpu.dot_dimension_numbers<[1], [0], [0], [1], [0, 0, 1, 1], [], []>} : vector<4x4xbf16>, vector<4x384xbf16>, vector<4x384xf32> -> vector<4x384xf32>
    %102 = arith.addf %96, %101 : vector<4x384xf32>
    %c0_104 = arith.constant 0 : index
    %c4_105 = arith.constant 4 : index
    %c142 = arith.constant 142 : index
    %103 = vector.load %arg1[%c0_104, %c4_105, %c142] : memref<1x12x576xbf16, #tpu.memory_space<vmem>>, vector<1x4x384xbf16>
    %104 = vector.shape_cast %103 : vector<1x4x384xbf16> to vector<4x384xbf16>
    %c0_106 = arith.constant 0 : index
    %c6_107 = arith.constant 6 : index
    %c0_108 = arith.constant 0 : index
    %c0_109 = arith.constant 0 : index
    %105 = vector.load %arg7[%c0_106, %c6_107, %c0_108, %c0_109] : memref<1x9x4x4xbf16, #tpu.memory_space<vmem>>, vector<1x1x4x4xbf16>
    %106 = vector.shape_cast %105 : vector<1x1x4x4xbf16> to vector<4x4xbf16>
    %cst_110 = arith.constant dense<0.000000e+00> : vector<4x384xf32>
    %107 = tpu.matmul %106, %104, %cst_110 {dimension_numbers = #tpu.dot_dimension_numbers<[1], [0], [0], [1], [0, 0, 1, 1], [], []>} : vector<4x4xbf16>, vector<4x384xbf16>, vector<4x384xf32> -> vector<4x384xf32>
    %108 = arith.addf %102, %107 : vector<4x384xf32>
    %c0_111 = arith.constant 0 : index
    %c4_112 = arith.constant 4 : index
    %c144 = arith.constant 144 : index
    %109 = vector.load %arg1[%c0_111, %c4_112, %c144] : memref<1x12x576xbf16, #tpu.memory_space<vmem>>, vector<1x4x384xbf16>
    %110 = vector.shape_cast %109 : vector<1x4x384xbf16> to vector<4x384xbf16>
    %c0_113 = arith.constant 0 : index
    %c7_114 = arith.constant 7 : index
    %c0_115 = arith.constant 0 : index
    %c0_116 = arith.constant 0 : index
    %111 = vector.load %arg7[%c0_113, %c7_114, %c0_115, %c0_116] : memref<1x9x4x4xbf16, #tpu.memory_space<vmem>>, vector<1x1x4x4xbf16>
    %112 = vector.shape_cast %111 : vector<1x1x4x4xbf16> to vector<4x4xbf16>
    %cst_117 = arith.constant dense<0.000000e+00> : vector<4x384xf32>
    %113 = tpu.matmul %112, %110, %cst_117 {dimension_numbers = #tpu.dot_dimension_numbers<[1], [0], [0], [1], [0, 0, 1, 1], [], []>} : vector<4x4xbf16>, vector<4x384xbf16>, vector<4x384xf32> -> vector<4x384xf32>
    %114 = arith.addf %108, %113 : vector<4x384xf32>
    %c0_118 = arith.constant 0 : index
    %c4_119 = arith.constant 4 : index
    %c146 = arith.constant 146 : index
    %115 = vector.load %arg1[%c0_118, %c4_119, %c146] : memref<1x12x576xbf16, #tpu.memory_space<vmem>>, vector<1x4x384xbf16>
    %116 = vector.shape_cast %115 : vector<1x4x384xbf16> to vector<4x384xbf16>
    %c0_120 = arith.constant 0 : index
    %c8_121 = arith.constant 8 : index
    %c0_122 = arith.constant 0 : index
    %c0_123 = arith.constant 0 : index
    %117 = vector.load %arg7[%c0_120, %c8_121, %c0_122, %c0_123] : memref<1x9x4x4xbf16, #tpu.memory_space<vmem>>, vector<1x1x4x4xbf16>
    %118 = vector.shape_cast %117 : vector<1x1x4x4xbf16> to vector<4x4xbf16>
    %cst_124 = arith.constant dense<0.000000e+00> : vector<4x384xf32>
    %119 = tpu.matmul %118, %116, %cst_124 {dimension_numbers = #tpu.dot_dimension_numbers<[1], [0], [0], [1], [0, 0, 1, 1], [], []>} : vector<4x4xbf16>, vector<4x384xbf16>, vector<4x384xf32> -> vector<4x384xf32>
    %120 = arith.addf %114, %119 : vector<4x384xf32>
    %c4_125 = arith.constant 4 : index
    %c0_126 = arith.constant 0 : index
    %121 = vector.load %arg2[%c4_125, %c0_126] : memref<12x1xf32, #tpu.memory_space<vmem>>, vector<4x1xf32>
    %122 = vector.broadcast %121 : vector<4x1xf32> to vector<4x384xf32>
    %123 = arith.mulf %120, %122 : vector<4x384xf32>
    %c4_127 = arith.constant 4 : index
    %c0_128 = arith.constant 0 : index
    %124 = vector.load %arg3[%c4_127, %c0_128] : memref<12x1xf32, #tpu.memory_space<vmem>>, vector<4x1xf32>
    %125 = vector.broadcast %124 : vector<4x1xf32> to vector<4x384xf32>
    %126 = arith.addf %123, %125 : vector<4x384xf32>
    %127 = arith.negf %126 : vector<4x384xf32>
    %128 = math.exp %127 : vector<4x384xf32>
    %cst_129 = arith.constant 1.000000e+00 : f32
    %129 = vector.broadcast %cst_129 : f32 to vector<4x384xf32>
    %130 = arith.addf %129, %128 : vector<4x384xf32>
    %131 = arith.divf %129, %130 : vector<4x384xf32>
    %132 = arith.mulf %126, %131 : vector<4x384xf32>
    %c0_130 = arith.constant 0 : index
    %c0_131 = arith.constant 0 : index
    %133 = vector.load %arg10[%c0_130, %c0_131] : memref<12x4xbf16, #tpu.memory_space<vmem>>, vector<12x4xbf16>
    %134 = arith.truncf %132 : vector<4x384xf32> to vector<4x384xbf16>
    %cst_132 = arith.constant dense<0.000000e+00> : vector<12x384xf32>
    %135 = tpu.matmul %133, %134, %cst_132 {dimension_numbers = #tpu.dot_dimension_numbers<[1], [0], [0], [1], [0, 0, 1, 1], [], []>} : vector<12x4xbf16>, vector<4x384xbf16>, vector<12x384xf32> -> vector<12x384xf32>
    %136 = arith.addf %67, %135 : vector<12x384xf32>
    %c0_133 = arith.constant 0 : index
    %c8_134 = arith.constant 8 : index
    %c21 = arith.constant 21 : index
    %137 = vector.load %arg1[%c0_133, %c8_134, %c21] : memref<1x12x576xbf16, #tpu.memory_space<vmem>>, vector<1x4x384xbf16>
    %138 = vector.shape_cast %137 : vector<1x4x384xbf16> to vector<4x384xbf16>
    %c0_135 = arith.constant 0 : index
    %c0_136 = arith.constant 0 : index
    %c0_137 = arith.constant 0 : index
    %c0_138 = arith.constant 0 : index
    %139 = vector.load %arg8[%c0_135, %c0_136, %c0_137, %c0_138] : memref<1x9x4x4xbf16, #tpu.memory_space<vmem>>, vector<1x1x4x4xbf16>
    %140 = vector.shape_cast %139 : vector<1x1x4x4xbf16> to vector<4x4xbf16>
    %cst_139 = arith.constant dense<0.000000e+00> : vector<4x384xf32>
    %141 = tpu.matmul %140, %138, %cst_139 {dimension_numbers = #tpu.dot_dimension_numbers<[1], [0], [0], [1], [0, 0, 1, 1], [], []>} : vector<4x4xbf16>, vector<4x384xbf16>, vector<4x384xf32> -> vector<4x384xf32>
    %c0_140 = arith.constant 0 : index
    %c8_141 = arith.constant 8 : index
    %c24 = arith.constant 24 : index
    %142 = vector.load %arg1[%c0_140, %c8_141, %c24] : memref<1x12x576xbf16, #tpu.memory_space<vmem>>, vector<1x4x384xbf16>
    %143 = vector.shape_cast %142 : vector<1x4x384xbf16> to vector<4x384xbf16>
    %c0_142 = arith.constant 0 : index
    %c1_143 = arith.constant 1 : index
    %c0_144 = arith.constant 0 : index
    %c0_145 = arith.constant 0 : index
    %144 = vector.load %arg8[%c0_142, %c1_143, %c0_144, %c0_145] : memref<1x9x4x4xbf16, #tpu.memory_space<vmem>>, vector<1x1x4x4xbf16>
    %145 = vector.shape_cast %144 : vector<1x1x4x4xbf16> to vector<4x4xbf16>
    %cst_146 = arith.constant dense<0.000000e+00> : vector<4x384xf32>
    %146 = tpu.matmul %145, %143, %cst_146 {dimension_numbers = #tpu.dot_dimension_numbers<[1], [0], [0], [1], [0, 0, 1, 1], [], []>} : vector<4x4xbf16>, vector<4x384xbf16>, vector<4x384xf32> -> vector<4x384xf32>
    %147 = arith.addf %141, %146 : vector<4x384xf32>
    %c0_147 = arith.constant 0 : index
    %c8_148 = arith.constant 8 : index
    %c27 = arith.constant 27 : index
    %148 = vector.load %arg1[%c0_147, %c8_148, %c27] : memref<1x12x576xbf16, #tpu.memory_space<vmem>>, vector<1x4x384xbf16>
    %149 = vector.shape_cast %148 : vector<1x4x384xbf16> to vector<4x384xbf16>
    %c0_149 = arith.constant 0 : index
    %c2_150 = arith.constant 2 : index
    %c0_151 = arith.constant 0 : index
    %c0_152 = arith.constant 0 : index
    %150 = vector.load %arg8[%c0_149, %c2_150, %c0_151, %c0_152] : memref<1x9x4x4xbf16, #tpu.memory_space<vmem>>, vector<1x1x4x4xbf16>
    %151 = vector.shape_cast %150 : vector<1x1x4x4xbf16> to vector<4x4xbf16>
    %cst_153 = arith.constant dense<0.000000e+00> : vector<4x384xf32>
    %152 = tpu.matmul %151, %149, %cst_153 {dimension_numbers = #tpu.dot_dimension_numbers<[1], [0], [0], [1], [0, 0, 1, 1], [], []>} : vector<4x4xbf16>, vector<4x384xbf16>, vector<4x384xf32> -> vector<4x384xf32>
    %153 = arith.addf %147, %152 : vector<4x384xf32>
    %c0_154 = arith.constant 0 : index
    %c8_155 = arith.constant 8 : index
    %c93 = arith.constant 93 : index
    %154 = vector.load %arg1[%c0_154, %c8_155, %c93] : memref<1x12x576xbf16, #tpu.memory_space<vmem>>, vector<1x4x384xbf16>
    %155 = vector.shape_cast %154 : vector<1x4x384xbf16> to vector<4x384xbf16>
    %c0_156 = arith.constant 0 : index
    %c3_157 = arith.constant 3 : index
    %c0_158 = arith.constant 0 : index
    %c0_159 = arith.constant 0 : index
    %156 = vector.load %arg8[%c0_156, %c3_157, %c0_158, %c0_159] : memref<1x9x4x4xbf16, #tpu.memory_space<vmem>>, vector<1x1x4x4xbf16>
    %157 = vector.shape_cast %156 : vector<1x1x4x4xbf16> to vector<4x4xbf16>
    %cst_160 = arith.constant dense<0.000000e+00> : vector<4x384xf32>
    %158 = tpu.matmul %157, %155, %cst_160 {dimension_numbers = #tpu.dot_dimension_numbers<[1], [0], [0], [1], [0, 0, 1, 1], [], []>} : vector<4x4xbf16>, vector<4x384xbf16>, vector<4x384xf32> -> vector<4x384xf32>
    %159 = arith.addf %153, %158 : vector<4x384xf32>
    %c0_161 = arith.constant 0 : index
    %c8_162 = arith.constant 8 : index
    %c96_163 = arith.constant 96 : index
    %160 = vector.load %arg1[%c0_161, %c8_162, %c96_163] : memref<1x12x576xbf16, #tpu.memory_space<vmem>>, vector<1x4x384xbf16>
    %161 = vector.shape_cast %160 : vector<1x4x384xbf16> to vector<4x384xbf16>
    %c0_164 = arith.constant 0 : index
    %c4_165 = arith.constant 4 : index
    %c0_166 = arith.constant 0 : index
    %c0_167 = arith.constant 0 : index
    %162 = vector.load %arg8[%c0_164, %c4_165, %c0_166, %c0_167] : memref<1x9x4x4xbf16, #tpu.memory_space<vmem>>, vector<1x1x4x4xbf16>
    %163 = vector.shape_cast %162 : vector<1x1x4x4xbf16> to vector<4x4xbf16>
    %cst_168 = arith.constant dense<0.000000e+00> : vector<4x384xf32>
    %164 = tpu.matmul %163, %161, %cst_168 {dimension_numbers = #tpu.dot_dimension_numbers<[1], [0], [0], [1], [0, 0, 1, 1], [], []>} : vector<4x4xbf16>, vector<4x384xbf16>, vector<4x384xf32> -> vector<4x384xf32>
    %165 = arith.addf %159, %164 : vector<4x384xf32>
    %c0_169 = arith.constant 0 : index
    %c8_170 = arith.constant 8 : index
    %c99 = arith.constant 99 : index
    %166 = vector.load %arg1[%c0_169, %c8_170, %c99] : memref<1x12x576xbf16, #tpu.memory_space<vmem>>, vector<1x4x384xbf16>
    %167 = vector.shape_cast %166 : vector<1x4x384xbf16> to vector<4x384xbf16>
    %c0_171 = arith.constant 0 : index
    %c5_172 = arith.constant 5 : index
    %c0_173 = arith.constant 0 : index
    %c0_174 = arith.constant 0 : index
    %168 = vector.load %arg8[%c0_171, %c5_172, %c0_173, %c0_174] : memref<1x9x4x4xbf16, #tpu.memory_space<vmem>>, vector<1x1x4x4xbf16>
    %169 = vector.shape_cast %168 : vector<1x1x4x4xbf16> to vector<4x4xbf16>
    %cst_175 = arith.constant dense<0.000000e+00> : vector<4x384xf32>
    %170 = tpu.matmul %169, %167, %cst_175 {dimension_numbers = #tpu.dot_dimension_numbers<[1], [0], [0], [1], [0, 0, 1, 1], [], []>} : vector<4x4xbf16>, vector<4x384xbf16>, vector<4x384xf32> -> vector<4x384xf32>
    %171 = arith.addf %165, %170 : vector<4x384xf32>
    %c0_176 = arith.constant 0 : index
    %c8_177 = arith.constant 8 : index
    %c165 = arith.constant 165 : index
    %172 = vector.load %arg1[%c0_176, %c8_177, %c165] : memref<1x12x576xbf16, #tpu.memory_space<vmem>>, vector<1x4x384xbf16>
    %173 = vector.shape_cast %172 : vector<1x4x384xbf16> to vector<4x384xbf16>
    %c0_178 = arith.constant 0 : index
    %c6_179 = arith.constant 6 : index
    %c0_180 = arith.constant 0 : index
    %c0_181 = arith.constant 0 : index
    %174 = vector.load %arg8[%c0_178, %c6_179, %c0_180, %c0_181] : memref<1x9x4x4xbf16, #tpu.memory_space<vmem>>, vector<1x1x4x4xbf16>
    %175 = vector.shape_cast %174 : vector<1x1x4x4xbf16> to vector<4x4xbf16>
    %cst_182 = arith.constant dense<0.000000e+00> : vector<4x384xf32>
    %176 = tpu.matmul %175, %173, %cst_182 {dimension_numbers = #tpu.dot_dimension_numbers<[1], [0], [0], [1], [0, 0, 1, 1], [], []>} : vector<4x4xbf16>, vector<4x384xbf16>, vector<4x384xf32> -> vector<4x384xf32>
    %177 = arith.addf %171, %176 : vector<4x384xf32>
    %c0_183 = arith.constant 0 : index
    %c8_184 = arith.constant 8 : index
    %c168 = arith.constant 168 : index
    %178 = vector.load %arg1[%c0_183, %c8_184, %c168] : memref<1x12x576xbf16, #tpu.memory_space<vmem>>, vector<1x4x384xbf16>
    %179 = vector.shape_cast %178 : vector<1x4x384xbf16> to vector<4x384xbf16>
    %c0_185 = arith.constant 0 : index
    %c7_186 = arith.constant 7 : index
    %c0_187 = arith.constant 0 : index
    %c0_188 = arith.constant 0 : index
    %180 = vector.load %arg8[%c0_185, %c7_186, %c0_187, %c0_188] : memref<1x9x4x4xbf16, #tpu.memory_space<vmem>>, vector<1x1x4x4xbf16>
    %181 = vector.shape_cast %180 : vector<1x1x4x4xbf16> to vector<4x4xbf16>
    %cst_189 = arith.constant dense<0.000000e+00> : vector<4x384xf32>
    %182 = tpu.matmul %181, %179, %cst_189 {dimension_numbers = #tpu.dot_dimension_numbers<[1], [0], [0], [1], [0, 0, 1, 1], [], []>} : vector<4x4xbf16>, vector<4x384xbf16>, vector<4x384xf32> -> vector<4x384xf32>
    %183 = arith.addf %177, %182 : vector<4x384xf32>
    %c0_190 = arith.constant 0 : index
    %c8_191 = arith.constant 8 : index
    %c171 = arith.constant 171 : index
    %184 = vector.load %arg1[%c0_190, %c8_191, %c171] : memref<1x12x576xbf16, #tpu.memory_space<vmem>>, vector<1x4x384xbf16>
    %185 = vector.shape_cast %184 : vector<1x4x384xbf16> to vector<4x384xbf16>
    %c0_192 = arith.constant 0 : index
    %c8_193 = arith.constant 8 : index
    %c0_194 = arith.constant 0 : index
    %c0_195 = arith.constant 0 : index
    %186 = vector.load %arg8[%c0_192, %c8_193, %c0_194, %c0_195] : memref<1x9x4x4xbf16, #tpu.memory_space<vmem>>, vector<1x1x4x4xbf16>
    %187 = vector.shape_cast %186 : vector<1x1x4x4xbf16> to vector<4x4xbf16>
    %cst_196 = arith.constant dense<0.000000e+00> : vector<4x384xf32>
    %188 = tpu.matmul %187, %185, %cst_196 {dimension_numbers = #tpu.dot_dimension_numbers<[1], [0], [0], [1], [0, 0, 1, 1], [], []>} : vector<4x4xbf16>, vector<4x384xbf16>, vector<4x384xf32> -> vector<4x384xf32>
    %189 = arith.addf %183, %188 : vector<4x384xf32>
    %c8_197 = arith.constant 8 : index
    %c0_198 = arith.constant 0 : index
    %190 = vector.load %arg2[%c8_197, %c0_198] : memref<12x1xf32, #tpu.memory_space<vmem>>, vector<4x1xf32>
    %191 = vector.broadcast %190 : vector<4x1xf32> to vector<4x384xf32>
    %192 = arith.mulf %189, %191 : vector<4x384xf32>
    %c8_199 = arith.constant 8 : index
    %c0_200 = arith.constant 0 : index
    %193 = vector.load %arg3[%c8_199, %c0_200] : memref<12x1xf32, #tpu.memory_space<vmem>>, vector<4x1xf32>
    %194 = vector.broadcast %193 : vector<4x1xf32> to vector<4x384xf32>
    %195 = arith.addf %192, %194 : vector<4x384xf32>
    %196 = arith.negf %195 : vector<4x384xf32>
    %197 = math.exp %196 : vector<4x384xf32>
    %cst_201 = arith.constant 1.000000e+00 : f32
    %198 = vector.broadcast %cst_201 : f32 to vector<4x384xf32>
    %199 = arith.addf %198, %197 : vector<4x384xf32>
    %200 = arith.divf %198, %199 : vector<4x384xf32>
    %201 = arith.mulf %195, %200 : vector<4x384xf32>
    %c0_202 = arith.constant 0 : index
    %c0_203 = arith.constant 0 : index
    %202 = vector.load %arg11[%c0_202, %c0_203] : memref<12x4xbf16, #tpu.memory_space<vmem>>, vector<12x4xbf16>
    %203 = arith.truncf %201 : vector<4x384xf32> to vector<4x384xbf16>
    %cst_204 = arith.constant dense<0.000000e+00> : vector<12x384xf32>
    %204 = tpu.matmul %202, %203, %cst_204 {dimension_numbers = #tpu.dot_dimension_numbers<[1], [0], [0], [1], [0, 0, 1, 1], [], []>} : vector<12x4xbf16>, vector<4x384xbf16>, vector<12x384xf32> -> vector<12x384xf32>
    %205 = arith.addf %136, %204 : vector<12x384xf32>
    %c0_205 = arith.constant 0 : index
    %c0_206 = arith.constant 0 : index
    %206 = vector.load %arg4[%c0_205, %c0_206] : memref<12x1xf32, #tpu.memory_space<vmem>>, vector<12x1xf32>
    %207 = vector.broadcast %206 : vector<12x1xf32> to vector<12x384xf32>
    %208 = arith.mulf %205, %207 : vector<12x384xf32>
    %c0_207 = arith.constant 0 : index
    %c0_208 = arith.constant 0 : index
    %209 = vector.load %arg5[%c0_207, %c0_208] : memref<12x1xf32, #tpu.memory_space<vmem>>, vector<12x1xf32>
    %210 = vector.broadcast %209 : vector<12x1xf32> to vector<12x384xf32>
    %211 = arith.addf %208, %210 : vector<12x384xf32>
    %212 = arith.negf %211 : vector<12x384xf32>
    %213 = math.exp %212 : vector<12x384xf32>
    %cst_209 = arith.constant 1.000000e+00 : f32
    %214 = vector.broadcast %cst_209 : f32 to vector<12x384xf32>
    %215 = arith.addf %214, %213 : vector<12x384xf32>
    %216 = arith.divf %214, %215 : vector<12x384xf32>
    %217 = arith.mulf %211, %216 : vector<12x384xf32>
    %c0_210 = arith.constant 0 : index
    %c0_211 = arith.constant 0 : index
    %c96_212 = arith.constant 96 : index
    %218 = vector.load %arg1[%c0_210, %c0_211, %c96_212] : memref<1x12x576xbf16, #tpu.memory_space<vmem>>, vector<1x12x384xbf16>
    %219 = vector.shape_cast %218 : vector<1x12x384xbf16> to vector<12x384xbf16>
    %220 = arith.extf %219 : vector<12x384xbf16> to vector<12x384xf32>
    %221 = arith.addf %217, %220 : vector<12x384xf32>
    %c0_213 = arith.constant 0 : index
    %c0_214 = arith.constant 0 : index
    %c0_215 = arith.constant 0 : index
    %222 = vector.load %arg12[%c0_213, %c0_214, %c0_215] : memref<1x12x384xf32, #tpu.memory_space<vmem>>, vector<1x12x384xf32>
    %223 = vector.shape_cast %222 : vector<1x12x384xf32> to vector<12x384xf32>
    %224 = vector.shape_cast %221 : vector<12x384xf32> to vector<1x12x384xf32>
    tpu.vector_store %arg12[%c0_213, %c0_214, %c0_215], %224 {strides = array<i32>} : memref<1x12x384xf32, #tpu.memory_space<vmem>>, vector<1x12x384xf32>,
    return
  }
  func.func @transform_0(%arg0: i32) -> (i32, i32, i32) {
    %c0_i32 = arith.constant 0 : i32
    %c0_i32_0 = arith.constant 0 : i32
    %c0_i32_1 = arith.constant 0 : i32
    return %arg0, %c0_i32, %c0_i32_0 : i32, i32, i32
  }
  func.func @transform_1(%arg0: i32) -> (i32, i32) {
    %c0_i32 = arith.constant 0 : i32
    %c0_i32_0 = arith.constant 0 : i32
    %c0_i32_1 = arith.constant 0 : i32
    return %c0_i32, %c0_i32_0 : i32, i32
  }
  func.func @transform_2(%arg0: i32) -> (i32, i32) {
    %c0_i32 = arith.constant 0 : i32
    %c0_i32_0 = arith.constant 0 : i32
    %c0_i32_1 = arith.constant 0 : i32
    return %c0_i32, %c0_i32_0 : i32, i32
  }
  func.func @transform_3(%arg0: i32) -> (i32, i32) {
    %c0_i32 = arith.constant 0 : i32
    %c0_i32_0 = arith.constant 0 : i32
    %c0_i32_1 = arith.constant 0 : i32
    return %c0_i32, %c0_i32_0 : i32, i32
  }
  func.func @transform_4(%arg0: i32) -> (i32, i32) {
    %c0_i32 = arith.constant 0 : i32
    %c0_i32_0 = arith.constant 0 : i32
    %c0_i32_1 = arith.constant 0 : i32
    return %c0_i32, %c0_i32_0 : i32, i32
  }
  func.func @transform_5(%arg0: i32) -> (i32, i32, i32, i32) {
    %c0_i32 = arith.constant 0 : i32
    %c0_i32_0 = arith.constant 0 : i32
    %c0_i32_1 = arith.constant 0 : i32
    %c0_i32_2 = arith.constant 0 : i32
    return %arg0, %c0_i32, %c0_i32_0, %c0_i32_1 : i32, i32, i32, i32
  }
  func.func @transform_6(%arg0: i32) -> (i32, i32, i32, i32) {
    %c0_i32 = arith.constant 0 : i32
    %c0_i32_0 = arith.constant 0 : i32
    %c0_i32_1 = arith.constant 0 : i32
    %c0_i32_2 = arith.constant 0 : i32
    return %arg0, %c0_i32, %c0_i32_0, %c0_i32_1 : i32, i32, i32, i32
  }
  func.func @transform_7(%arg0: i32) -> (i32, i32, i32, i32) {
    %c0_i32 = arith.constant 0 : i32
    %c0_i32_0 = arith.constant 0 : i32
    %c0_i32_1 = arith.constant 0 : i32
    %c0_i32_2 = arith.constant 0 : i32
    return %arg0, %c0_i32, %c0_i32_0, %c0_i32_1 : i32, i32, i32, i32
  }
  func.func @transform_8(%arg0: i32) -> (i32, i32) {
    %c0_i32 = arith.constant 0 : i32
    %c0_i32_0 = arith.constant 0 : i32
    %c0_i32_1 = arith.constant 0 : i32
    return %c0_i32, %c0_i32_0 : i32, i32
  }
  func.func @transform_9(%arg0: i32) -> (i32, i32) {
    %c0_i32 = arith.constant 0 : i32
    %c0_i32_0 = arith.constant 0 : i32
    %c0_i32_1 = arith.constant 0 : i32
    return %c0_i32, %c0_i32_0 : i32, i32
  }
  func.func @transform_10(%arg0: i32) -> (i32, i32) {
    %c0_i32 = arith.constant 0 : i32
    %c0_i32_0 = arith.constant 0 : i32
    %c0_i32_1 = arith.constant 0 : i32
    return %c0_i32, %c0_i32_0 : i32, i32
  }
  func.func @transform_11(%arg0: i32) -> (i32, i32, i32) {
    %c0_i32 = arith.constant 0 : i32
    %c0_i32_0 = arith.constant 0 : i32
    %c0_i32_1 = arith.constant 0 : i32
    return %arg0, %c0_i32, %c0_i32_0 : i32, i32, i32
  }
}

</mosaic_0001>

<bundles_post_ra>
// kernel: _lambda_.1
= control target key start
LH: loop header
LB: loop body
LE: loop exit
PB: predicated region body
PF: predicated region fallthrough
CT: control target
= control target key end

     0   :  { %s4780_s17 = smov 0   ;;  %s5354_s0 = inlined_call_operand.vmem [shape: bf16[2,12,576], index: 0, kind: input, shape index: {}]   ;;  %s5355_s1 = inlined_call_operand.vmem [shape: f32[12,1], index: 1, kind: input, shape index: {}]   ;;  %s5356_s2 = inlined_call_operand.vmem [shape: f32[12,1], index: 2, kind: input, shape index: {}]   ;;  %s5357_s3 = inlined_call_operand.vmem [shape: f32[12,1], index: 3, kind: input, shape index: {}]   ;;  %s5358_s4 = inlined_call_operand.vmem [shape: f32[12,1], index: 4, kind: input, shape index: {}]   ;;  %s5359_s5 = inlined_call_operand.vmem [shape: bf16[2,9,4,4], index: 5, kind: input, shape index: {}]   ;;  %s5360_s6 = inlined_call_operand.vmem [shape: bf16[2,9,4,4], index: 6, kind: input, shape index: {}]   ;;  %s5361_s7 = inlined_call_operand.vmem [shape: bf16[2,9,4,4], index: 7, kind: input, shape index: {}]   ;;  %s5362_s8 = inlined_call_operand.vmem [shape: bf16[12,4], index: 8, kind: input, shape index: {}]   ;;  %s5363_s9 = inlined_call_operand.vmem [shape: bf16[12,4], index: 9, kind: input, shape index: {}]   ;;  %s5364_s10 = inlined_call_operand.vmem [shape: bf16[12,4], index: 10, kind: input, shape index: {}]   ;;  %s5365_s11 = inlined_call_operand.vmem [shape: f32[2,12,384], index: 11, kind: output, shape index: {}]  }
   0x1 LB: > { %s4134_s18 = sadd.s32 4294967295, %s4690_s17   ;;  %p4138_p0 = scmp.ge.s32.totalorder %s4690_s17, 1  ;;  %s4690_s17 = sphi %s4780_s17, %s21_s17  }
   0x2   : > { %p367_p1 = scmp.lt.s32.totalorder %s4690_s17, 3 }
   0x4   : > { %p368_p2 = pnand %p4138_p0, %p367_p1 }
   0x5   : > { %p422_p3 = scmp.lt.s32.totalorder (!%p368_p2), %s4134_s18, 1  ;;  %s4695_s23 = smov (!%p368_p2), 56  }
   0x6   : > { %371 = sbr.rel (%p368_p2) target bundleno = 1083 (0x43b), region = 64  ;;  %s4696_s24 = smov (!%p368_p2), 57  }
   0x7   : > { %s4697_s25 = smov (!%p368_p2), 55   ;;  %s4698_s26 = smov (!%p368_p2), 33  }
   0x8   : > { %s4699_s27 = smov (!%p368_p2), 32   ;;  %s4700_s28 = smov (!%p368_p2), 31  }
   0x9   : > { %s4701_s29 = smov (!%p368_p2), 9   ;;  %s4702_s30 = smov (!%p368_p2), 8  }
   0xa   : > { %s4703_s12 = smov (!%p368_p2), 7   ;;  %s4704_s13 = smov (!%p368_p2), 80  }
   0xb   : > { %v4692_v0 = vmov 0.0   ;;  %s5367_s18 = smov (!%p422_p3, %s4134_s18), 1  ;;  %v4693_v1 = vmov 0   ;;  %vm4694_vm0 = vmmov 0   ;;  %s4705_s14 = smov 82   ;;  %vm471_vm1 = vcmask 457728  }
   0xc   : > { %4358 = vmatprep.subr.bf16.mxu1 %v4692_v0  ;;  %s4538_s19 = smul.u32 40, %s5367_s18  ;;  %521 = vmatprep.mubr.bf16.mxu0 %v4693_v1  ;;  %s4706_s15 = smov 78   ;;  %vm479_vm2 = vcmask 1041408   ;;  %vm475_vm3 = vcmask 31744   ;;  %vm578_vm4 = vcmask 465920   ;;  %vm685_vm5 = vcmask 449536  }
   0xd   : > { %4360 = vmatprep.mubr.msk.bf16.mxu1 %vm4694_vm0, %v4692_v0  ;;  %4577 = vset.pattern.permute.xlu0 %v4693_v1  ;;  %s4707_s16 = smov 34   ;;  %s4817_s20 = smul.u32 18, %s5367_s18  ;;  %vm795_vm6 = vcmask 269312   ;;  %v2512_v61 = vld [vmem:[%s5356_s2 + $0x4] sm:$0xf]  ;;  %vm905_vm7 = vcmask 261120  }
   0xe   : > { %s4795_s22 = scalar_lea.vmem %s5354_s0, %s4538_s19  ;;  %4578 = vset.pattern.permute.xlu1 %v4693_v1  ;;  %s4708_s19 = smov 30   ;;  %vm1015_vm8 = vcmask 252928   ;;  %vm1125_vm9 = vcmask 72704   ;;  %vm1235_vm10 = vcmask 64512   ;;  %vm1345_vm11 = vcmask 56320  }
   0xf   : > { %v449_v2 = vld [vmem:[%s4795_s22 + $0x8] sm:$0x33]  ;;  %v448_v3 = vld [vmem:[%s4795_s22] sm:$0x33]  ;;  %v1489_v8 = vld [vmem:[%s4795_s22] sm:$0xcc] }
  0x10   : > { %v4147_v4 = vcombine.low %v449_v2, %v449_v2  ;;  %v4145_v5 = vcombine.low %v448_v3, %v448_v3  ;;  %v4148_v6 = vcombine.high %v449_v2, %v449_v2  ;;  %v4146_v7 = vcombine.high %v448_v3, %v448_v3  ;;  %v1490_v11 = vld [vmem:[%s4795_s22 + $0x8] sm:$0xcc]  ;;  %s4712_s21 = smov 104  }
  0x11   : > { %v4188_v9 = vcombine.high %v1489_v8, %v1489_v8  ;;  %v4187_v10 = vcombine.low %v1489_v8, %v1489_v8  ;;  %v4190_v14 = vcombine.high %v1490_v11, %v1490_v11  ;;  %v4189_v15 = vcombine.low %v1490_v11, %v1490_v11  ;;  %v2157_v18 = vld [vmem:[%s4795_s22 + $0x4] sm:$0xcc]  ;;  %v2158_v21 = vld [vmem:[%s4795_s22 + $0xc] sm:$0xcc]  ;;  %v2749_v11 = vld [vmem:[%s4795_s22 + $0x14] sm:$0x33] }
  0x12   : > { %467 = vrot.lane.b32.xlu1 %v4147_v4, %s4695_s23  ;;  %463 = vrot.lane.b32.xlu0 %v4145_v5, %s4695_s23  ;;  %v4215_v19 = vcombine.high %v2157_v18, %v2157_v18  ;;  %v4214_v20 = vcombine.low %v2157_v18, %v2157_v18  ;;  %v4217_v26 = vcombine.high %v2158_v21, %v2158_v21  ;;  %vm1516_vm12 = vcmask 654336  }
  0x13   : > { %v1505_v12 = vrot.slane %v4188_v9, 2  ;;  %v1504_v13 = vrot.slane %v4187_v10, 2  ;;  %v1507_v16 = vrot.slane %v4190_v14, 2  ;;  %v1506_v17 = vrot.slane %v4189_v15, 2 }
  0x14   : > { %v4819_v24 = vrot.slane %v4215_v19, 2  ;;  %v4821_v25 = vrot.slane %v4214_v20, 2  ;;  %v4216_v27 = vcombine.low %v2158_v21, %v2158_v21  ;;  %v2174_v35 = vrot.slane %v4217_v26, 2  ;;  %v2750_v20 = vld [vmem:[%s4795_s22 + $0x1c] sm:$0x33] }
  0x15   : > { %v4893_v19 = vcombine.high %v2749_v11, %v2749_v11  ;;  %vm1621_vm13 = vcmask 670720   ;;  %vm1728_vm14 = vcmask 637952   ;;  %vm1838_vm15 = vcmask 277504  }
  0x16   : > { %469 = vrot.lane.b32.xlu1 %v4148_v6, %s4695_s23  ;;  %465 = vrot.lane.b32.xlu0 %v4146_v7, %s4695_s23  ;;  %v2173_v37 = vrot.slane %v4216_v27, 2  ;;  %v4905_v27 = vcombine.high %v2750_v20, %v2750_v20  ;;  %s4713_s23 = smov 107  }
  0x1a   : > { %572 = vrot.lane.b32.xlu1 %v4146_v7, %s4696_s24  ;;  %570 = vrot.lane.b32.xlu0 %v4145_v5, %s4696_s24 }
  0x1e   : > { %576 = vrot.lane.b32.xlu1 %v4148_v6, %s4696_s24  ;;  %574 = vrot.lane.b32.xlu0 %v4147_v4, %s4696_s24  ;;  %s4827_s24 = scalar_lea.vmem %s5359_s5, %s4817_s20 }
  0x1f   : > { %v4144_v36 = vld [vmem:[%s4827_s24 + $0x2] sm:$0x3]  ;;  %v450_v49 = vld [vmem:[%s4827_s24] sm:$0x3]  ;;  %v4155_v59 = vld [vmem:[%s4827_s24 + $0x4] sm:$0x3] }
  0x20   : > { %v4159_v10 = vld [vmem:[%s4827_s24 + $0x6] sm:$0x3]  ;;  %v4163_v26 = vld [vmem:[%s4827_s24 + $0x8] sm:$0x3] }
  0x22   : > { %679 = vrot.lane.b32.xlu1 %v4146_v7, %s4697_s25  ;;  %677 = vrot.lane.b32.xlu0 %v4145_v5, %s4697_s25 }
  0x26   : > { %683 = vrot.lane.b32.xlu1 %v4148_v6, %s4697_s25  ;;  %681 = vrot.lane.b32.xlu0 %v4147_v4, %s4697_s25  ;;  %s4709_s25 = smov 114  }
  0x2a   : > { %789 = vrot.lane.b32.xlu1 %v4146_v7, %s4698_s26  ;;  %787 = vrot.lane.b32.xlu0 %v4145_v5, %s4698_s26 }
  0x2e   : > { %793 = vrot.lane.b32.xlu1 %v4148_v6, %s4698_s26  ;;  %791 = vrot.lane.b32.xlu0 %v4147_v4, %s4698_s26  ;;  %s4710_s26 = smov 112  }
  0x32   : > { %899 = vrot.lane.b32.xlu1 %v4146_v7, %s4699_s27  ;;  %897 = vrot.lane.b32.xlu0 %v4145_v5, %s4699_s27 }
  0x36   : > { %903 = vrot.lane.b32.xlu1 %v4148_v6, %s4699_s27  ;;  %901 = vrot.lane.b32.xlu0 %v4147_v4, %s4699_s27 }
  0x3a   : > { %1009 = vrot.lane.b32.xlu1 %v4146_v7, %s4700_s28  ;;  %1007 = vrot.lane.b32.xlu0 %v4145_v5, %s4700_s28 }
  0x3e   : > { %1013 = vrot.lane.b32.xlu1 %v4148_v6, %s4700_s28  ;;  %1011 = vrot.lane.b32.xlu0 %v4147_v4, %s4700_s28  ;;  %s4711_s28 = smov 110  }
  0x42   : > { %1119 = vrot.lane.b32.xlu1 %v4146_v7, %s4701_s29  ;;  %1117 = vrot.lane.b32.xlu0 %v4145_v5, %s4701_s29 }
  0x46   : > { %1123 = vrot.lane.b32.xlu1 %v4148_v6, %s4701_s29  ;;  %1121 = vrot.lane.b32.xlu0 %v4147_v4, %s4701_s29  ;;  %s4976_s29 = scalar_lea.vmem %s5360_s6, %s4817_s20 }
  0x4a   : > { %1229 = vrot.lane.b32.xlu1 %v4146_v7, %s4702_s30  ;;  %1227 = vrot.lane.b32.xlu0 %v4145_v5, %s4702_s30 }
  0x4e   : > { %1233 = vrot.lane.b32.xlu1 %v4148_v6, %s4702_s30  ;;  %1231 = vrot.lane.b32.xlu0 %v4147_v4, %s4702_s30  ;;  %s4716_s30 = smov 29  }
  0x52   : > { %1339 = vrot.lane.b32.xlu1 %v4146_v7, %s4703_s12  ;;  %1337 = vrot.lane.b32.xlu0 %v4145_v5, %s4703_s12  ;;  %v1445_v7 = vld [vmem:[%s5355_s1] sm:$0xf] }
  0x56   : > { %1343 = vrot.lane.b32.xlu1 %v4148_v6, %s4703_s12  ;;  %1341 = vrot.lane.b32.xlu0 %v4147_v4, %s4703_s12  ;;  %v2503_v4 = vld [vmem:[%s5355_s1 + $0x4] sm:$0xf]  ;;  %s4717_s12 = smov 91  }
  0x5a   : > { %1510 = vrot.lane.b32.xlu1 %v1505_v12, %s4704_s13  ;;  %1508 = vrot.lane.b32.xlu0 %v1504_v13, %s4704_s13 }
  0x5e   : > { %1514 = vrot.lane.b32.xlu1 %v1507_v16, %s4704_s13  ;;  %1512 = vrot.lane.b32.xlu0 %v1506_v17, %s4704_s13  ;;  %s4718_s13 = smov 88  }
  0x62   : > { %1615 = vrot.lane.b32.xlu1 %v1505_v12, %s4705_s14  ;;  %1613 = vrot.lane.b32.xlu0 %v1504_v13, %s4705_s14 }
  0x66   : > { %1619 = vrot.lane.b32.xlu1 %v1507_v16, %s4705_s14  ;;  %1617 = vrot.lane.b32.xlu0 %v1506_v17, %s4705_s14  ;;  %s4719_s14 = smov 85  }
  0x6a   : > { %1722 = vrot.lane.b32.xlu1 %v1505_v12, %s4706_s15  ;;  %1720 = vrot.lane.b32.xlu0 %v1504_v13, %s4706_s15 }
  0x6e   : > { %1726 = vrot.lane.b32.xlu1 %v1507_v16, %s4706_s15  ;;  %1724 = vrot.lane.b32.xlu0 %v1506_v17, %s4706_s15 }
  0x72   : > { %1832 = vrot.lane.b32.xlu1 %v1505_v12, %s4707_s16  ;;  %1830 = vrot.lane.b32.xlu0 %v1504_v13, %s4707_s16 }
  0x76   : > { %1836 = vrot.lane.b32.xlu1 %v1507_v16, %s4707_s16  ;;  %1834 = vrot.lane.b32.xlu0 %v1506_v17, %s4707_s16 }
  0x7a   : > { %1942 = vrot.lane.b32.xlu1 %v1505_v12, %s4699_s27  ;;  %1940 = vrot.lane.b32.xlu0 %v1504_v13, %s4699_s27 }
  0x7e   : > { %1946 = vrot.lane.b32.xlu1 %v1507_v16, %s4699_s27  ;;  %1944 = vrot.lane.b32.xlu0 %v1506_v17, %s4699_s27 }
  0x82   : > { %2051 = vrot.lane.b32.xlu1 %v1505_v12, %s4708_s19  ;;  %2049 = vrot.lane.b32.xlu0 %v1504_v13, %s4708_s19  ;;  %v1454_v12 = vld [vmem:[%s5356_s2] sm:$0xf]  ;;  %v4883_v13 = vcombine.low %v2749_v11, %v2749_v11 }
  0x84   : > { %v468_v22 = vpop.permute.xlu1 %467  ;;  %v464_v23 = vpop.permute.xlu0 %463 }
  0x86   : > { %2055 = vrot.lane.b32.xlu1 %v1507_v16, %s4708_s19  ;;  %2053 = vrot.lane.b32.xlu0 %v1506_v17, %s4708_s19 }
  0x88   : > { %v470_v28 = vpop.permute.xlu1 %469  ;;  %v466_v29 = vpop.permute.xlu0 %465 }
  0x89   : > { %v473_v30 = vsel %vm471_vm1, %v466_v29, %v468_v22  ;;  %v472_v31 = vsel %vm471_vm1, %v464_v23, %v466_v29  ;;  %v474_v32 = vsel %vm471_vm1, %v468_v22, %v470_v28  ;;  %v4900_v23 = vcombine.low %v2750_v20, %v2750_v20 }
  0x8a   : > { %2177 = vrot.lane.b32.xlu1 %v4819_v24, %s4709_s25  ;;  %2175 = vrot.lane.b32.xlu0 %v4821_v25, %s4709_s25  ;;  %v481_v33 = vsel %vm479_vm2, %v472_v31, 0  ;;  %v487_v34 = vsel %vm479_vm2, %v474_v32, 0  ;;  %vm2057_vm1 = vcmask 244736  }
  0x8b   : > { %4149 = vmatprep.subr.msk.bf16.mxu0 %vm479_vm2, %v473_v30  ;;  %4359 = vmatpush3.bf16.msra.mxu1 %v487_v34 }
  0x8c   : > { %504 = vmatpush1.bf16.msra.mxu0 %v481_v33  ;;  %v573_v38 = vpop.permute.xlu1 %572  ;;  %v571_v39 = vpop.permute.xlu0 %570  ;;  %4364 = vmatprep.subr.bf16.mxu1 %v4692_v0 }
  0x8d   : > { %v579_v40 = vsel %vm578_vm4, %v571_v39, %v573_v38 }
  0x8e   : > { %4361 = vmatmul.mubr.msk.bf16.vlgmr.msra.gmra.mxu1 %vm475_vm3, %v4144_v36  ;;  %2181 = vrot.lane.b32.xlu1 %v2174_v35, %s4709_s25  ;;  %v586_v45 = vsel %vm479_vm2, %v579_v40, 0 }
  0x8f   : > { %2179 = vrot.lane.b32.xlu0 %v2173_v37, %s4709_s25  ;;  %4150 = vmatmul.mubr.msk.bf16.vlgmr.msra.gmra.mxu0 %vm475_vm3, %v4144_v36  ;;  %s4714_s25 = smov 101  }
  0x90   : > { %v577_v41 = vpop.permute.xlu1 %576  ;;  %v575_v42 = vpop.permute.xlu0 %574  ;;  %626 = vmatprep.mubr.bf16.mxu0 %v4693_v1  ;;  %4366 = vmatprep.mubr.msk.bf16.mxu1 %vm4694_vm0, %v4692_v0 }
  0x91   : > { %v581_v43 = vsel %vm578_vm4, %v575_v42, %v577_v41  ;;  %v580_v44 = vsel %vm578_vm4, %v573_v38, %v575_v42  ;;  %vm2183_vm4 = vcmask 932864  }
  0x92   : > { %2287 = vrot.lane.b32.xlu1 %v4819_v24, %s4710_s26  ;;  %4152 = vmatprep.subr.msk.bf16.mxu0 %vm479_vm2, %v580_v44  ;;  %v592_v46 = vsel %vm479_vm2, %v581_v43, 0 }
  0x93   : > { %2285 = vrot.lane.b32.xlu0 %v4821_v25, %s4710_s26  ;;  %609 = vmatpush1.bf16.msra.mxu0 %v586_v45 }
  0x94   : > { %4365 = vmatpush3.bf16.msra.mxu1 %v592_v46  ;;  %v680_v47 = vpop.permute.xlu1 %679  ;;  %v678_v48 = vpop.permute.xlu0 %677 }
  0x95   : > { %4370 = vmatprep.subr.bf16.mxu1 %v4692_v0  ;;  %v686_v50 = vsel %vm685_vm5, %v678_v48, %v680_v47 }
  0x96   : > { %2291 = vrot.lane.b32.xlu1 %v2174_v35, %s4710_s26  ;;  %v693_v55 = vsel %vm479_vm2, %v686_v50, 0 }
  0x97   : > { %2289 = vrot.lane.b32.xlu0 %v2173_v37, %s4710_s26  ;;  %4153 = vmatmul.mubr.msk.bf16.vlgmr.msra.gmra.mxu0 %vm475_vm3, %v450_v49  ;;  %s4715_s26 = smov 35  }
  0x98   : > { %4367 = vmatmul.mubr.msk.bf16.vlgmr.msra.gmra.mxu1 %vm475_vm3, %v450_v49  ;;  %v684_v51 = vpop.permute.xlu1 %683  ;;  %v682_v52 = vpop.permute.xlu0 %681  ;;  %733 = vmatprep.mubr.bf16.mxu0 %v4693_v1 }
  0x99   : > { %v688_v53 = vsel %vm685_vm5, %v682_v52, %v684_v51  ;;  %v687_v54 = vsel %vm685_vm5, %v680_v47, %v682_v52  ;;  %4372 = vmatprep.mubr.msk.bf16.mxu1 %vm4694_vm0, %v4692_v0  ;;  %v4171_v47 = vld [vmem:[%s4827_s24 + $0xc] sm:$0x3]  ;;  %vm2293_vm5 = vcmask 916480  }
  0x9a   : > { %2397 = vrot.lane.b32.xlu1 %v4819_v24, %s4711_s28  ;;  %4156 = vmatprep.subr.msk.bf16.mxu0 %vm479_vm2, %v687_v54  ;;  %v699_v56 = vsel %vm479_vm2, %v688_v53, 0 }
  0x9b   : > { %2395 = vrot.lane.b32.xlu0 %v4821_v25, %s4711_s28  ;;  %716 = vmatpush1.bf16.msra.mxu0 %v693_v55 }
  0x9c   : > { %4371 = vmatpush3.bf16.msra.mxu1 %v699_v56  ;;  %v790_v57 = vpop.permute.xlu1 %789  ;;  %v788_v58 = vpop.permute.xlu0 %787 }
  0x9d   : > { %4376 = vmatprep.subr.bf16.mxu1 %v4692_v0  ;;  %v796_v60 = vsel %vm795_vm6, %v788_v58, %v790_v57 }
  0x9e   : > { %2401 = vrot.lane.b32.xlu1 %v2174_v35, %s4711_s28  ;;  %v803_v5 = vsel %vm479_vm2, %v796_v60, 0 }
  0x9f   : > { %2399 = vrot.lane.b32.xlu0 %v2173_v37, %s4711_s28  ;;  %4157 = vmatmul.mubr.msk.bf16.vlgmr.msra.gmra.mxu0 %vm475_vm3, %v4155_v59  ;;  %v4167_v37 = vld [vmem:[%s4827_s24 + $0xa] sm:$0x3] }
  0xa0   : > { %4373 = vmatmul.mubr.msk.bf16.vlgmr.msra.gmra.mxu1 %vm475_vm3, %v4155_v59  ;;  %v794_v62 = vpop.permute.xlu1 %793  ;;  %v792_v63 = vpop.permute.xlu0 %791  ;;  %843 = vmatprep.mubr.bf16.mxu0 %v4693_v1 }
  0xa1   : > { %v798_v2 = vsel %vm795_vm6, %v792_v63, %v794_v62  ;;  %v797_v3 = vsel %vm795_vm6, %v790_v57, %v792_v63  ;;  %4378 = vmatprep.mubr.msk.bf16.mxu1 %vm4694_vm0, %v4692_v0  ;;  %v4175_v57 = vld [vmem:[%s4827_s24 + $0xe] sm:$0x3]  ;;  %vm2403_vm6 = vcmask 900096  }
  0xa2   : > { %4160 = vmatprep.subr.msk.bf16.mxu0 %vm479_vm2, %v797_v3  ;;  %v809_v6 = vsel %vm479_vm2, %v798_v2, 0  ;;  %2515 = vperm.xlu1 %4578, %v2512_v61  }
  0xa3   : > { %826 = vmatpush1.bf16.msra.mxu0 %v803_v5  ;;  %4377 = vmatpush3.bf16.msra.mxu1 %v809_v6  ;;  %v4179_v5 = vld [vmem:[%s4827_s24 + $0x10] sm:$0x3] }
  0xa4   : > { %v900_v8 = vpop.permute.xlu1 %899  ;;  %v898_v9 = vpop.permute.xlu0 %897  ;;  %4382 = vmatprep.subr.bf16.mxu1 %v4692_v0  ;;  %2506 = vperm.xlu0 %4577, %v2503_v4  }
  0xa5   : > { %v906_v14 = vsel %vm905_vm7, %v898_v9, %v900_v8 }
  0xa6   : > { %1448 = vperm.xlu1 %4578, %v1445_v7   ;;  %v913_v21 = vsel %vm479_vm2, %v906_v14, 0 }
  0xa7   : > { %4161 = vmatmul.mubr.msk.bf16.vlgmr.msra.gmra.mxu0 %vm475_vm3, %v4159_v10 }
  0xa8   : > { %4379 = vmatmul.mubr.msk.bf16.vlgmr.msra.gmra.mxu1 %vm475_vm3, %v4159_v10  ;;  %v904_v15 = vpop.permute.xlu1 %903  ;;  %v902_v16 = vpop.permute.xlu0 %901  ;;  %953 = vmatprep.mubr.bf16.mxu0 %v4693_v1 }
  0xa9   : > { %v908_v17 = vsel %vm905_vm7, %v902_v16, %v904_v15  ;;  %v907_v18 = vsel %vm905_vm7, %v900_v8, %v902_v16  ;;  %4384 = vmatprep.mubr.msk.bf16.mxu1 %vm4694_vm0, %v4692_v0  ;;  %1457 = vperm.xlu0 %4577, %v1454_v12   ;;  %v4186_v16 = vld [vmem:[%s4976_s29 + $0x2] sm:$0x3] }
  0xaa   : > { %4164 = vmatprep.subr.msk.bf16.mxu0 %vm479_vm2, %v907_v18  ;;  %v919_v22 = vsel %vm479_vm2, %v908_v17, 0  ;;  %2764 = vrot.lane.b32.xlu1 %v4883_v13, %s4712_s21  ;;  %v3413_v17 = vld [vmem:[%s4795_s22 + $0x18] sm:$0x33] }
  0xab   : > { %936 = vmatpush1.bf16.msra.mxu0 %v913_v21  ;;  %4383 = vmatpush3.bf16.msra.mxu1 %v919_v22  ;;  %v4989_v18 = vcombine.low %v3413_v17, %v3413_v17 }
  0xac   : > { %v1010_v24 = vpop.permute.xlu1 %1009  ;;  %v1008_v25 = vpop.permute.xlu0 %1007  ;;  %4388 = vmatprep.subr.bf16.mxu1 %v4692_v0 }
  0xad   : > { %2766 = vrot.lane.b32.xlu0 %v4893_v19, %s4712_s21  ;;  %v1016_v28 = vsel %vm1015_vm8, %v1008_v25, %v1010_v24 }
  0xae   : > { %2768 = vrot.lane.b32.xlu1 %v4900_v23, %s4712_s21  ;;  %v1023_v33 = vsel %vm479_vm2, %v1016_v28, 0 }
  0xaf   : > { %4165 = vmatmul.mubr.msk.bf16.vlgmr.msra.gmra.mxu0 %vm475_vm3, %v4163_v26 }
  0xb0   : > { %4385 = vmatmul.mubr.msk.bf16.vlgmr.msra.gmra.mxu1 %vm475_vm3, %v4163_v26  ;;  %v1014_v29 = vpop.permute.xlu1 %1013  ;;  %v1012_v30 = vpop.permute.xlu0 %1011  ;;  %1063 = vmatprep.mubr.bf16.mxu0 %v4693_v1 }
  0xb1   : > { %v1018_v31 = vsel %vm1015_vm8, %v1012_v30, %v1014_v29  ;;  %v1017_v32 = vsel %vm1015_vm8, %v1010_v24, %v1012_v30  ;;  %4390 = vmatprep.mubr.msk.bf16.mxu1 %vm4694_vm0, %v4692_v0  ;;  %2770 = vrot.lane.b32.xlu0 %v4905_v27, %s4712_s21  ;;  %vm2772_vm8 = vcmask 850944  }
  0xb2   : > { %4168 = vmatprep.subr.msk.bf16.mxu0 %vm479_vm2, %v1017_v32  ;;  %v1029_v34 = vsel %vm479_vm2, %v1018_v31, 0  ;;  %2869 = vrot.lane.b32.xlu1 %v4883_v13, %s4713_s23  ;;  %v1491_v31 = vld [vmem:[%s4976_s29] sm:$0x3] }
  0xb3   : > { %1046 = vmatpush1.bf16.msra.mxu0 %v1023_v33  ;;  %4389 = vmatpush3.bf16.msra.mxu1 %v1029_v34 }
  0xb4   : > { %v1120_v35 = vpop.permute.xlu1 %1119  ;;  %v1118_v36 = vpop.permute.xlu0 %1117  ;;  %4394 = vmatprep.subr.bf16.mxu1 %v4692_v0 }
  0xb5   : > { %2871 = vrot.lane.b32.xlu0 %v4893_v19, %s4713_s23  ;;  %v1126_v38 = vsel %vm1125_vm9, %v1118_v36, %v1120_v35 }
  0xb6   : > { %2873 = vrot.lane.b32.xlu1 %v4900_v23, %s4713_s23  ;;  %v1133_v43 = vsel %vm479_vm2, %v1126_v38, 0 }
  0xb7   : > { %4169 = vmatmul.mubr.msk.bf16.vlgmr.msra.gmra.mxu0 %vm475_vm3, %v4167_v37 }
  0xb8   : > { %4391 = vmatmul.mubr.msk.bf16.vlgmr.msra.gmra.mxu1 %vm475_vm3, %v4167_v37  ;;  %v1124_v39 = vpop.permute.xlu1 %1123  ;;  %v1122_v40 = vpop.permute.xlu0 %1121  ;;  %1173 = vmatprep.mubr.bf16.mxu0 %v4693_v1 }
  0xb9   : > { %v1127_v41 = vsel %vm1125_vm9, %v1120_v35, %v1122_v40  ;;  %v1128_v42 = vsel %vm1125_vm9, %v1122_v40, %v1124_v39  ;;  %4396 = vmatprep.mubr.msk.bf16.mxu1 %vm4694_vm0, %v4692_v0  ;;  %2875 = vrot.lane.b32.xlu0 %v4905_v27, %s4713_s23  ;;  %vm2877_vm9 = vcmask 875520   ;;  %s5192_s23 = scalar_lea.vmem %s5361_s7, %s4817_s20  ;;  %s4540_s20 = smul.u32 48, %s5367_s18 }
  0xba   : > { %v1139_v44 = vsel %vm479_vm2, %v1128_v42, 0  ;;  %4172 = vmatprep.subr.msk.bf16.mxu0 %vm479_vm2, %v1127_v41  ;;  %2976 = vrot.lane.b32.xlu1 %v4883_v13, %s4714_s25  ;;  %v4197_v41 = vld [vmem:[%s4976_s29 + $0x4] sm:$0x3] }
  0xbb   : > { %1156 = vmatpush1.bf16.msra.mxu0 %v1133_v43  ;;  %4395 = vmatpush3.bf16.msra.mxu1 %v1139_v44  ;;  %s446_s24 = scalar_lea.vmem %s5365_s11, %s4540_s20 }
  0xbc   : > { %v1230_v45 = vpop.permute.xlu1 %1229  ;;  %v1228_v46 = vpop.permute.xlu0 %1227  ;;  %4400 = vmatprep.subr.bf16.mxu1 %v4692_v0 }
  0xbd   : > { %2978 = vrot.lane.b32.xlu0 %v4893_v19, %s4714_s25  ;;  %v1236_v48 = vsel %vm1235_vm10, %v1228_v46, %v1230_v45 }
  0xbe   : > { %2980 = vrot.lane.b32.xlu1 %v4900_v23, %s4714_s25  ;;  %v1243_v53 = vsel %vm479_vm2, %v1236_v48, 0 }
  0xbf   : > { %4173 = vmatmul.mubr.msk.bf16.vlgmr.msra.gmra.mxu0 %vm475_vm3, %v4171_v47 }
  0xc0   : > { %4397 = vmatmul.mubr.msk.bf16.vlgmr.msra.gmra.mxu1 %vm475_vm3, %v4171_v47  ;;  %v1234_v49 = vpop.permute.xlu1 %1233  ;;  %v1232_v50 = vpop.permute.xlu0 %1231  ;;  %1283 = vmatprep.mubr.bf16.mxu0 %v4693_v1 }
  0xc1   : > { %v1237_v51 = vsel %vm1235_vm10, %v1230_v45, %v1232_v50  ;;  %v1238_v52 = vsel %vm1235_vm10, %v1232_v50, %v1234_v49  ;;  %4402 = vmatprep.mubr.msk.bf16.mxu1 %vm4694_vm0, %v4692_v0  ;;  %2982 = vrot.lane.b32.xlu0 %v4905_v27, %s4714_s25  ;;  %vm2984_vm10 = vcmask 826368  }
  0xc2   : > { %v1249_v54 = vsel %vm479_vm2, %v1238_v52, 0  ;;  %4176 = vmatprep.subr.msk.bf16.mxu0 %vm479_vm2, %v1237_v51  ;;  %3086 = vrot.lane.b32.xlu1 %v4883_v13, %s4715_s26  ;;  %v4201_v51 = vld [vmem:[%s4976_s29 + $0x6] sm:$0x3] }
  0xc3   : > { %1266 = vmatpush1.bf16.msra.mxu0 %v1243_v53  ;;  %4401 = vmatpush3.bf16.msra.mxu1 %v1249_v54  ;;  %v3755_v53 = vld [vmem:[%s5355_s1 + $0x8] sm:$0xf] }
  0xc4   : > { %v1340_v55 = vpop.permute.xlu1 %1339  ;;  %v1338_v56 = vpop.permute.xlu0 %1337  ;;  %4406 = vmatprep.subr.bf16.mxu1 %v4692_v0 }
  0xc5   : > { %3088 = vrot.lane.b32.xlu0 %v4893_v19, %s4715_s26  ;;  %v1346_v58 = vsel %vm1345_vm11, %v1338_v56, %v1340_v55 }
  0xc6   : > { %3090 = vrot.lane.b32.xlu1 %v4900_v23, %s4715_s26  ;;  %v1353_v63 = vsel %vm479_vm2, %v1346_v58, 0 }
  0xc7   : > { %4177 = vmatmul.mubr.msk.bf16.vlgmr.msra.gmra.mxu0 %vm475_vm3, %v4175_v57 }
  0xc8   : > { %4403 = vmatmul.mubr.msk.bf16.vlgmr.msra.gmra.mxu1 %vm475_vm3, %v4175_v57  ;;  %v1344_v59 = vpop.permute.xlu1 %1343  ;;  %v1342_v60 = vpop.permute.xlu0 %1341  ;;  %1393 = vmatprep.mubr.bf16.mxu0 %v4693_v1 }
  0xc9   : > { %v1347_v61 = vsel %vm1345_vm11, %v1340_v55, %v1342_v60  ;;  %v1348_v62 = vsel %vm1345_vm11, %v1342_v60, %v1344_v59  ;;  %4408 = vmatprep.mubr.msk.bf16.mxu1 %vm4694_vm0, %v4692_v0  ;;  %3092 = vrot.lane.b32.xlu0 %v4905_v27, %s4715_s26  ;;  %v3764_v60 = vld [vmem:[%s5356_s2 + $0x8] sm:$0xf]  ;;  %vm3094_vm11 = vcmask 285696  }
  0xca   : > { %v1359_v2 = vsel %vm479_vm2, %v1348_v62, 0  ;;  %4180 = vmatprep.subr.msk.bf16.mxu0 %vm479_vm2, %v1347_v61  ;;  %3196 = vrot.lane.b32.xlu1 %v4883_v13, %s4699_s27  ;;  %v3906_v61 = vld [vmem:[%s5357_s3] sm:$0xff] }
  0xcb   : > { %1376 = vmatpush1.bf16.msra.mxu0 %v1353_v63  ;;  %4407 = vmatpush3.bf16.msra.mxu1 %v1359_v2  ;;  %v4205_v2 = vld [vmem:[%s4976_s29 + $0x8] sm:$0x3] }
  0xcc   : > { %v1511_v3 = vpop.permute.xlu1 %1510  ;;  %v1509_v4 = vpop.permute.xlu0 %1508  ;;  %4412 = vmatprep.subr.bf16.mxu1 %v4692_v0 }
  0xcd   : > { %3198 = vrot.lane.b32.xlu0 %v4893_v19, %s4699_s27  ;;  %v1517_v6 = vsel %vm1516_vm12, %v1509_v4, %v1511_v3 }
  0xce   : > { %3200 = vrot.lane.b32.xlu1 %v4900_v23, %s4699_s27  ;;  %v1524_v11 = vsel %vm479_vm2, %v1517_v6, 0 }
  0xcf   : > { %4181 = vmatmul.mubr.msk.bf16.vlgmr.msra.gmra.mxu0 %vm475_vm3, %v4179_v5 }
  0xd0   : > { %4409 = vmatmul.mubr.msk.bf16.vlgmr.msra.gmra.mxu1 %vm475_vm3, %v4179_v5  ;;  %v1515_v7 = vpop.permute.xlu1 %1514  ;;  %v1513_v8 = vpop.permute.xlu0 %1512  ;;  %1564 = vmatprep.mubr.bf16.mxu0 %v4693_v1  ;;  %v3924_v5 = vld [vmem:[%s5358_s4] sm:$0xff] }
  0xd1   : > { %v1518_v9 = vsel %vm1516_vm12, %v1511_v3, %v1513_v8  ;;  %v1519_v10 = vsel %vm1516_vm12, %v1513_v8, %v1515_v7  ;;  %4414 = vmatprep.mubr.msk.bf16.mxu1 %vm4694_vm0, %v4692_v0  ;;  %3202 = vrot.lane.b32.xlu0 %v4905_v27, %s4699_s27  ;;  %v3907_v3 = vld [vmem:[%s5357_s3 + $0x8] sm:$0xf]  ;;  %vm3313_vm12 = vcmask 236544  }
  0xd2   : > { %v1530_v12 = vsel %vm479_vm2, %v1519_v10, 0  ;;  %4191 = vmatprep.subr.msk.bf16.mxu0 %vm479_vm2, %v1518_v9  ;;  %3305 = vrot.lane.b32.xlu1 %v4883_v13, %s4716_s30 }
  0xd3   : > { %1547 = vmatpush1.bf16.msra.mxu0 %v1524_v11  ;;  %4413 = vmatpush3.bf16.msra.mxu1 %v1530_v12  ;;  %v3925_v12 = vld [vmem:[%s5358_s4 + $0x8] sm:$0xf] }
  0xd4   : > { %v1616_v14 = vpop.permute.xlu1 %1615  ;;  %v1614_v15 = vpop.permute.xlu0 %1613  ;;  %4418 = vmatprep.subr.bf16.mxu1 %v4692_v0 }
  0xd5   : > { %3307 = vrot.lane.b32.xlu0 %v4893_v19, %s4716_s30  ;;  %v1622_v20 = vsel %vm1621_vm13, %v1614_v15, %v1616_v14  ;;  %v4269_v19 = vcombine.high %v3413_v17, %v3413_v17 }
  0xd6   : > { %3309 = vrot.lane.b32.xlu1 %v4900_v23, %s4716_s30  ;;  %v3414_v23 = vld [vmem:[%s4795_s22 + $0x20] sm:$0x33]  ;;  %v1629_v25 = vsel %vm479_vm2, %v1622_v20, 0 }
  0xd7   : > { %4192 = vmatmul.mubr.msk.bf16.vlgmr.msra.gmra.mxu0 %vm475_vm3, %v4186_v16  ;;  %v4270_v28 = vcombine.low %v3414_v23, %v3414_v23 }
  0xd8   : > { %4415 = vmatmul.mubr.msk.bf16.vlgmr.msra.gmra.mxu1 %vm475_vm3, %v4186_v16  ;;  %v1620_v13 = vpop.permute.xlu1 %1619  ;;  %v1618_v21 = vpop.permute.xlu0 %1617  ;;  %1669 = vmatprep.mubr.bf16.mxu0 %v4693_v1  ;;  %v4209_v16 = vld [vmem:[%s4976_s29 + $0xa] sm:$0x3] }
  0xd9   : > { %v1623_v22 = vsel %vm1621_vm13, %v1616_v14, %v1618_v21  ;;  %v1624_v24 = vsel %vm1621_vm13, %v1618_v21, %v1620_v13  ;;  %4420 = vmatprep.mubr.msk.bf16.mxu1 %vm4694_vm0, %v4692_v0  ;;  %3311 = vrot.lane.b32.xlu0 %v4905_v27, %s4716_s30  ;;  %v4271_v27 = vcombine.high %v3414_v23, %v3414_v23  ;;  %v4213_v23 = vld [vmem:[%s4976_s29 + $0xc] sm:$0x3]  ;;  %vm3435_vm13 = vcmask 744448  }
  0xda   : > { %v1635_v26 = vsel %vm479_vm2, %v1624_v24, 0  ;;  %4194 = vmatprep.subr.msk.bf16.mxu0 %vm479_vm2, %v1623_v22  ;;  %3427 = vrot.lane.b32.xlu1 %v4989_v18, %s4717_s12 }
  0xdb   : > { %1652 = vmatpush1.bf16.msra.mxu0 %v1629_v25  ;;  %4419 = vmatpush3.bf16.msra.mxu1 %v1635_v26 }
  0xdc   : > { %v1723_v29 = vpop.permute.xlu1 %1722  ;;  %v1721_v30 = vpop.permute.xlu0 %1720  ;;  %4424 = vmatprep.subr.bf16.mxu1 %v4692_v0 }
  0xdd   : > { %3429 = vrot.lane.b32.xlu0 %v4269_v19, %s4717_s12  ;;  %v1729_v32 = vsel %vm1728_vm14, %v1721_v30, %v1723_v29 }
  0xde   : > { %3431 = vrot.lane.b32.xlu1 %v4270_v28, %s4717_s12  ;;  %v1736_v37 = vsel %vm479_vm2, %v1729_v32, 0 }
  0xdf   : > { %4195 = vmatmul.mubr.msk.bf16.vlgmr.msra.gmra.mxu0 %vm475_vm3, %v1491_v31 }
  0xe0   : > { %4421 = vmatmul.mubr.msk.bf16.vlgmr.msra.gmra.mxu1 %vm475_vm3, %v1491_v31  ;;  %v1727_v33 = vpop.permute.xlu1 %1726  ;;  %v1725_v34 = vpop.permute.xlu0 %1724  ;;  %1776 = vmatprep.mubr.bf16.mxu0 %v4693_v1 }
  0xe1   : > { %v1730_v35 = vsel %vm1728_vm14, %v1723_v29, %v1725_v34  ;;  %v1731_v36 = vsel %vm1728_vm14, %v1725_v34, %v1727_v33  ;;  %4426 = vmatprep.mubr.msk.bf16.mxu1 %vm4694_vm0, %v4692_v0  ;;  %3433 = vrot.lane.b32.xlu0 %v4271_v27, %s4717_s12  ;;  %v4221_v34 = vld [vmem:[%s4976_s29 + $0xe] sm:$0x3]  ;;  %vm3545_vm14 = vcmask 719872  }
  0xe2   : > { %v1742_v38 = vsel %vm479_vm2, %v1731_v36, 0  ;;  %4198 = vmatprep.subr.msk.bf16.mxu0 %vm479_vm2, %v1730_v35  ;;  %3537 = vrot.lane.b32.xlu1 %v4989_v18, %s4718_s13 }
  0xe3   : > { %1759 = vmatpush1.bf16.msra.mxu0 %v1736_v37  ;;  %4425 = vmatpush3.bf16.msra.mxu1 %v1742_v38 }
  0xe4   : > { %v1833_v39 = vpop.permute.xlu1 %1832  ;;  %v1831_v40 = vpop.permute.xlu0 %1830  ;;  %4430 = vmatprep.subr.bf16.mxu1 %v4692_v0 }
  0xe5   : > { %3539 = vrot.lane.b32.xlu0 %v4269_v19, %s4718_s13  ;;  %v1839_v42 = vsel %vm1838_vm15, %v1831_v40, %v1833_v39 }
  0xe6   : > { %3541 = vrot.lane.b32.xlu1 %v4270_v28, %s4718_s13  ;;  %v1846_v47 = vsel %vm479_vm2, %v1839_v42, 0 }
  0xe7   : > { %4199 = vmatmul.mubr.msk.bf16.vlgmr.msra.gmra.mxu0 %vm475_vm3, %v4197_v41 }
  0xe8   : > { %4427 = vmatmul.mubr.msk.bf16.vlgmr.msra.gmra.mxu1 %vm475_vm3, %v4197_v41  ;;  %v1837_v43 = vpop.permute.xlu1 %1836  ;;  %v1835_v44 = vpop.permute.xlu0 %1834  ;;  %1886 = vmatprep.mubr.bf16.mxu0 %v4693_v1 }
  0xe9   : > { %v1840_v45 = vsel %vm1838_vm15, %v1833_v39, %v1835_v44  ;;  %v1841_v46 = vsel %vm1838_vm15, %v1835_v44, %v1837_v43  ;;  %4432 = vmatprep.mubr.msk.bf16.mxu1 %vm4694_vm0, %v4692_v0  ;;  %3543 = vrot.lane.b32.xlu0 %v4271_v27, %s4718_s13  ;;  %v4225_v43 = vld [vmem:[%s4976_s29 + $0x10] sm:$0x3]  ;;  %vm3655_vm15 = vcmask 695296  }
  0xea   : > { %v1852_v48 = vsel %vm479_vm2, %v1841_v46, 0  ;;  %4202 = vmatprep.subr.msk.bf16.mxu0 %vm479_vm2, %v1840_v45  ;;  %3647 = vrot.lane.b32.xlu1 %v4989_v18, %s4719_s14 }
  0xeb   : > { %1869 = vmatpush1.bf16.msra.mxu0 %v1846_v47  ;;  %4431 = vmatpush3.bf16.msra.mxu1 %v1852_v48 }
  0xec   : > { %v1943_v49 = vpop.permute.xlu1 %1942  ;;  %v1941_v50 = vpop.permute.xlu0 %1940  ;;  %4436 = vmatprep.subr.bf16.mxu1 %v4692_v0 }
  0xed   : > { %3649 = vrot.lane.b32.xlu0 %v4269_v19, %s4719_s14  ;;  %v1948_v52 = vsel %vm905_vm7, %v1941_v50, %v1943_v49 }
  0xee   : > { %3651 = vrot.lane.b32.xlu1 %v4270_v28, %s4719_s14  ;;  %v1955_v58 = vsel %vm479_vm2, %v1948_v52, 0 }
  0xef   : > { %4203 = vmatmul.mubr.msk.bf16.vlgmr.msra.gmra.mxu0 %vm475_vm3, %v4201_v51 }
  0xf0   : > { %4433 = vmatmul.mubr.msk.bf16.vlgmr.msra.gmra.mxu1 %vm475_vm3, %v4201_v51  ;;  %v1947_v54 = vpop.permute.xlu1 %1946  ;;  %v1945_v55 = vpop.permute.xlu0 %1944  ;;  %1995 = vmatprep.mubr.bf16.mxu0 %v4693_v1 }
  0xf1   : > { %v1949_v56 = vsel %vm905_vm7, %v1943_v49, %v1945_v55  ;;  %v1950_v57 = vsel %vm905_vm7, %v1945_v55, %v1947_v54  ;;  %4438 = vmatprep.mubr.msk.bf16.mxu1 %vm4694_vm0, %v4692_v0  ;;  %3653 = vrot.lane.b32.xlu0 %v4271_v27, %s4719_s14 }
  0xf2   : > { %v1961_v59 = vsel %vm479_vm2, %v1950_v57, 0  ;;  %4206 = vmatprep.subr.msk.bf16.mxu0 %vm479_vm2, %v1949_v56  ;;  %3758 = vperm.xlu1 %4578, %v3755_v53  }
  0xf3   : > { %1978 = vmatpush1.bf16.msra.mxu0 %v1955_v58  ;;  %4437 = vmatpush3.bf16.msra.mxu1 %v1961_v59 }
  0xf4   : > { %v2052_v62 = vpop.permute.xlu1 %2051  ;;  %v2050_v63 = vpop.permute.xlu0 %2049  ;;  %4442 = vmatprep.subr.bf16.mxu1 %v4692_v0 }
  0xf5   : > { %3767 = vperm.xlu0 %4577, %v3764_v60   ;;  %v2058_v4 = vsel %vm2057_vm1, %v2050_v63, %v2052_v62 }
  0xf6   : > { %3910 = vperm.xlu1 %4578, %v3906_v61   ;;  %v2065_v10 = vsel %vm479_vm2, %v2058_v4, 0 }
  0xf7   : > { %4207 = vmatmul.mubr.msk.bf16.vlgmr.msra.gmra.mxu0 %vm475_vm3, %v4205_v2 }
  0xf8   : > { %4439 = vmatmul.mubr.msk.bf16.vlgmr.msra.gmra.mxu1 %vm475_vm3, %v4205_v2  ;;  %v2056_v6 = vpop.permute.xlu1 %2055  ;;  %v2054_v7 = vpop.permute.xlu0 %2053  ;;  %2105 = vmatprep.mubr.bf16.mxu0 %v4693_v1 }
  0xf9   : > { %v2059_v8 = vsel %vm2057_vm1, %v2052_v62, %v2054_v7  ;;  %v2060_v9 = vsel %vm2057_vm1, %v2054_v7, %v2056_v6  ;;  %4444 = vmatprep.mubr.msk.bf16.mxu1 %vm4694_vm0, %v4692_v0  ;;  %3915 = vperm.xlu0 %4577, %v3907_v3  }
  0xfa   : > { %v2071_v11 = vsel %vm479_vm2, %v2060_v9, 0  ;;  %4210 = vmatprep.subr.msk.bf16.mxu0 %vm479_vm2, %v2059_v8  ;;  %3928 = vperm.xlu1 %4578, %v3924_v5  }
  0xfb   : > { %2088 = vmatpush1.bf16.msra.mxu0 %v2065_v10  ;;  %4443 = vmatpush3.bf16.msra.mxu1 %v2071_v11 }
  0xfc   : > { %v2178_v14 = vpop.permute.xlu1 %2177  ;;  %v2176_v15 = vpop.permute.xlu0 %2175  ;;  %4448 = vmatprep.subr.bf16.mxu1 %v4692_v0 }
  0xfd   : > { %3933 = vperm.xlu0 %4577, %v3925_v12   ;;  %v2184_v17 = vsel %vm2183_vm4, %v2176_v15, %v2178_v14 }
  0xfe   : > { %v2191_v22 = vsel %vm479_vm2, %v2184_v17, 0 }
  0xff   : > { %4211 = vmatmul.mubr.msk.bf16.vlgmr.msra.gmra.mxu0 %vm475_vm3, %v4209_v16 }
 0x100   : > { %4445 = vmatmul.mubr.msk.bf16.vlgmr.msra.gmra.mxu1 %vm475_vm3, %v4209_v16  ;;  %v2182_v18 = vpop.permute.xlu1 %2181  ;;  %2231 = vmatprep.mubr.bf16.mxu0 %v4693_v1 }
 0x101   : > { %v2180_v20 = vpop.permute.xlu0 %2179  ;;  %4450 = vmatprep.mubr.msk.bf16.mxu1 %vm4694_vm0, %v4692_v0 }
 0x102   : > { %v2185_v13 = vsel %vm2183_vm4, %v2178_v14, %v2180_v20  ;;  %v2186_v21 = vsel %vm2183_vm4, %v2180_v20, %v2182_v18 }
 0x103   : > { %v2197_v24 = vsel %vm479_vm2, %v2186_v21, 0  ;;  %4218 = vmatprep.subr.msk.bf16.mxu0 %vm479_vm2, %v2185_v13 }
 0x104   : > { %2214 = vmatpush1.bf16.msra.mxu0 %v2191_v22  ;;  %4449 = vmatpush3.bf16.msra.mxu1 %v2197_v24  ;;  %v2288_v19 = vpop.permute.xlu1 %2287 }
 0x105   : > { %v2286_v25 = vpop.permute.xlu0 %2285  ;;  %4454 = vmatprep.subr.bf16.mxu1 %v4692_v0 }
 0x106   : > { %v2294_v26 = vsel %vm2293_vm5, %v2286_v25, %v2288_v19 }
 0x107   : > { %4219 = vmatmul.mubr.msk.bf16.vlgmr.msra.gmra.mxu0 %vm475_vm3, %v4213_v23  ;;  %v2301_v27 = vsel %vm479_vm2, %v2294_v26, 0 }
 0x108   : > { %4451 = vmatmul.mubr.msk.bf16.vlgmr.msra.gmra.mxu1 %vm475_vm3, %v4213_v23  ;;  %v2292_v28 = vpop.permute.xlu1 %2291  ;;  %2341 = vmatprep.mubr.bf16.mxu0 %v4693_v1 }
 0x109   : > { %v2290_v29 = vpop.permute.xlu0 %2289  ;;  %4456 = vmatprep.mubr.msk.bf16.mxu1 %vm4694_vm0, %v4692_v0 }
 0x10a   : > { %v2295_v30 = vsel %vm2293_vm5, %v2288_v19, %v2290_v29  ;;  %v2296_v31 = vsel %vm2293_vm5, %v2290_v29, %v2292_v28 }
 0x10b   : > { %v2307_v32 = vsel %vm479_vm2, %v2296_v31, 0  ;;  %4222 = vmatprep.subr.msk.bf16.mxu0 %vm479_vm2, %v2295_v30 }
 0x10c   : > { %2324 = vmatpush1.bf16.msra.mxu0 %v2301_v27  ;;  %4455 = vmatpush3.bf16.msra.mxu1 %v2307_v32  ;;  %v2398_v33 = vpop.permute.xlu1 %2397 }
 0x10d   : > { %v2396_v35 = vpop.permute.xlu0 %2395  ;;  %4460 = vmatprep.subr.bf16.mxu1 %v4692_v0 }
 0x10e   : > { %v2404_v36 = vsel %vm2403_vm6, %v2396_v35, %v2398_v33 }
 0x10f   : > { %4223 = vmatmul.mubr.msk.bf16.vlgmr.msra.gmra.mxu0 %vm475_vm3, %v4221_v34  ;;  %v2411_v41 = vsel %vm479_vm2, %v2404_v36, 0 }
 0x110   : > { %4457 = vmatmul.mubr.msk.bf16.vlgmr.msra.gmra.mxu1 %vm475_vm3, %v4221_v34  ;;  %v2402_v37 = vpop.permute.xlu1 %2401  ;;  %2451 = vmatprep.mubr.bf16.mxu0 %v4693_v1 }
 0x111   : > { %v2400_v38 = vpop.permute.xlu0 %2399  ;;  %4462 = vmatprep.mubr.msk.bf16.mxu1 %vm4694_vm0, %v4692_v0 }
 0x112   : > { %v2405_v39 = vsel %vm2403_vm6, %v2398_v33, %v2400_v38  ;;  %v2406_v40 = vsel %vm2403_vm6, %v2400_v38, %v2402_v37 }
 0x113   : > { %v2417_v42 = vsel %vm479_vm2, %v2406_v40, 0  ;;  %4226 = vmatprep.subr.msk.bf16.mxu0 %vm479_vm2, %v2405_v39 }
 0x114   : > { %2434 = vmatpush1.bf16.msra.mxu0 %v2411_v41  ;;  %4461 = vmatpush3.bf16.msra.mxu1 %v2417_v42 }
 0x115   : > { %4466 = vmatprep.subr.bf16.mxu1 %v4692_v0 }
 0x117   : > { %4227 = vmatmul.mubr.msk.bf16.vlgmr.msra.gmra.mxu0 %vm475_vm3, %v4225_v43 }
 0x118   : > { %4463 = vmatmul.mubr.msk.bf16.vlgmr.msra.gmra.mxu1 %vm475_vm3, %v4225_v43  ;;  %2596 = vmatprep.mubr.bf16.mxu0 %v4693_v1 }
 0x119   : > { %4468 = vmatprep.mubr.msk.bf16.mxu1 %vm4694_vm0, %v4692_v0 }
 0x14e   : > { %v564_v44 = vpop.f32.mrf.mxu1 }
 0x14f   : > { %v523_v45 = vpop.f32.mrf.mxu0 }
 0x150   : > { %v4362_v46 = vpop.f32.mrf.mxu1 }
 0x151   : > { %v525_v47 = vpop.f32.mrf.mxu0 }
 0x152   : > { %v567_v48 = vpop.f32.mrf.mxu1 }
 0x153   : > { %v527_v49 = vpop.f32.mrf.mxu0 }
 0x154   : > { %v4363_v50 = vpop.f32.mrf.mxu1 }
 0x155   : > { %v528_v51 = vpop.f32.mrf.mxu0 }
 0x157   : > { %v628_v52 = vpop.f32.mrf.mxu0 }
 0x158   : > { %v629_v53 = vadd.f32 %v628_v52, %v523_v45  ;;  %v669_v54 = vpop.f32.mrf.mxu1 }
 0x159   : > { %v670_v55 = vadd.f32 %v669_v54, %v564_v44  ;;  %v630_v56 = vpop.f32.mrf.mxu0 }
 0x15a   : > { %v631_v57 = vadd.f32 %v630_v56, %v525_v47  ;;  %v4368_v58 = vpop.f32.mrf.mxu1 }
 0x15b   : > { %v632_v59 = vpop.f32.mrf.mxu0 }
 0x15c   : > { %v672_v60 = vpop.f32.mrf.mxu1 }
 0x15d   : > { %v633_v61 = vpop.f32.mrf.mxu0 }
 0x15e   : > { %v4369_v62 = vpop.f32.mrf.mxu1 }
 0x15f   : > { %v735_v63 = vpop.f32.mrf.mxu0 }
 0x160   : > { %v782_v2 = vadd.f32 %v735_v63, %v629_v53  ;;  %v776_v3 = vpop.f32.mrf.mxu1 }
 0x161   : > { %v784_v4 = vadd.f32 %v776_v3, %v670_v55  ;;  %v737_v5 = vpop.f32.mrf.mxu0 }
 0x162   : > { %v783_v6 = vadd.f32 %v737_v5, %v631_v57  ;;  %v4374_v7 = vpop.f32.mrf.mxu1 }
 0x163   : > { %v739_v8 = vpop.f32.mrf.mxu0 }
 0x164   : > { %v779_v9 = vpop.f32.mrf.mxu1 }
 0x165   : > { %v740_v10 = vpop.f32.mrf.mxu0 }
 0x166   : > { %v4375_v11 = vpop.f32.mrf.mxu1 }
 0x167   : > { %v845_v12 = vpop.f32.mrf.mxu0 }
 0x168   : > { %v892_v14 = vadd.f32 %v845_v12, %v782_v2  ;;  %v886_v15 = vpop.f32.mrf.mxu1 }
 0x169   : > { %v894_v16 = vadd.f32 %v886_v15, %v784_v4  ;;  %v847_v17 = vpop.f32.mrf.mxu0 }
 0x16a   : > { %v893_v18 = vadd.f32 %v847_v17, %v783_v6  ;;  %v4380_v20 = vpop.f32.mrf.mxu1 }
 0x16b   : > { %v849_v13 = vpop.f32.mrf.mxu0 }
 0x16c   : > { %v889_v21 = vpop.f32.mrf.mxu1 }
 0x16d   : > { %v850_v22 = vpop.f32.mrf.mxu0 }
 0x16e   : > { %v4381_v24 = vpop.f32.mrf.mxu1 }
 0x16f   : > { %v955_v19 = vpop.f32.mrf.mxu0 }
 0x170   : > { %v1002_v23 = vadd.f32 %v955_v19, %v892_v14  ;;  %v996_v25 = vpop.f32.mrf.mxu1 }
 0x171   : > { %v1004_v26 = vadd.f32 %v996_v25, %v894_v16  ;;  %v957_v28 = vpop.f32.mrf.mxu0 }
 0x172   : > { %v1003_v29 = vadd.f32 %v957_v28, %v893_v18  ;;  %v4386_v30 = vpop.f32.mrf.mxu1 }
 0x173   : > { %v959_v31 = vpop.f32.mrf.mxu0 }
 0x174   : > { %v999_v27 = vpop.f32.mrf.mxu1 }
 0x175   : > { %v960_v32 = vpop.f32.mrf.mxu0 }
 0x176   : > { %v4387_v33 = vpop.f32.mrf.mxu1 }
 0x177   : > { %v1065_v34 = vpop.f32.mrf.mxu0 }
 0x178   : > { %v1112_v35 = vadd.f32 %v1065_v34, %v1002_v23  ;;  %v1106_v36 = vpop.f32.mrf.mxu1 }
 0x179   : > { %v1114_v37 = vadd.f32 %v1106_v36, %v1004_v26  ;;  %v1067_v38 = vpop.f32.mrf.mxu0 }
 0x17a   : > { %v1113_v39 = vadd.f32 %v1067_v38, %v1003_v29  ;;  %v4392_v40 = vpop.f32.mrf.mxu1 }
 0x17b   : > { %v1069_v41 = vpop.f32.mrf.mxu0 }
 0x17c   : > { %v1109_v42 = vpop.f32.mrf.mxu1 }
 0x17d   : > { %v1070_v43 = vpop.f32.mrf.mxu0 }
 0x17e   : > { %v4393_v44 = vpop.f32.mrf.mxu1 }
 0x17f   : > { %v1175_v45 = vpop.f32.mrf.mxu0 }
 0x180   : > { %v1222_v46 = vadd.f32 %v1175_v45, %v1112_v35  ;;  %v1216_v47 = vpop.f32.mrf.mxu1 }
 0x181   : > { %v1224_v48 = vadd.f32 %v1216_v47, %v1114_v37  ;;  %v1177_v49 = vpop.f32.mrf.mxu0 }
 0x182   : > { %v1223_v50 = vadd.f32 %v1177_v49, %v1113_v39  ;;  %v4398_v51 = vpop.f32.mrf.mxu1 }
 0x183   : > { %v1179_v52 = vpop.f32.mrf.mxu0 }
 0x184   : > { %v1219_v53 = vpop.f32.mrf.mxu1 }
 0x185   : > { %v1180_v54 = vpop.f32.mrf.mxu0 }
 0x186   : > { %v4399_v55 = vpop.f32.mrf.mxu1 }
 0x187   : > { %v1285_v56 = vpop.f32.mrf.mxu0 }
 0x188   : > { %v1332_v57 = vadd.f32 %v1285_v56, %v1222_v46  ;;  %v1326_v58 = vpop.f32.mrf.mxu1 }
 0x189   : > { %v1334_v59 = vadd.f32 %v1326_v58, %v1224_v48  ;;  %v1287_v60 = vpop.f32.mrf.mxu0 }
 0x18a   : > { %v1333_v61 = vadd.f32 %v1287_v60, %v1223_v50  ;;  %v4404_v62 = vpop.f32.mrf.mxu1 }
 0x18b   : > { %v1289_v63 = vpop.f32.mrf.mxu0 }
 0x18c   : > { %v1329_v2 = vpop.f32.mrf.mxu1  ;;  %v5108_v63 = vpop.permute.xlu1 %2515 }
 0x18d   : > { %v1290_v3 = vpop.f32.mrf.mxu0 }
 0x18e   : > { %v4405_v4 = vpop.f32.mrf.mxu1 }
 0x18f   : > { %v1395_v5 = vpop.f32.mrf.mxu0 }
 0x190   : > { %v5102_v6 = vadd.f32 %v1395_v5, %v1332_v57  ;;  %v1436_v7 = vpop.f32.mrf.mxu1 }
 0x191   : > { %v5104_v8 = vadd.f32 %v1436_v7, %v1334_v59  ;;  %v1397_v9 = vpop.f32.mrf.mxu0  ;;  %v2507_v7 = vpop.permute.xlu0 %2506 }
 0x192   : > { %v5106_v10 = vadd.f32 %v1397_v9, %v1333_v61  ;;  %v4410_v11 = vpop.f32.mrf.mxu1 }
 0x193   : > { %v1399_v12 = vpop.f32.mrf.mxu0 }
 0x194   : > { %v1439_v14 = vpop.f32.mrf.mxu1 }
 0x195   : > { %v1400_v15 = vpop.f32.mrf.mxu0 }
 0x196   : > { %v4411_v16 = vpop.f32.mrf.mxu1  ;;  %v1449_v15 = vpop.permute.xlu1 %1448 }
 0x197   : > { %v1566_v17 = vpop.f32.mrf.mxu0 }
 0x198   : > { %v1607_v18 = vpop.f32.mrf.mxu1 }
 0x199   : > { %v1568_v20 = vpop.f32.mrf.mxu0 }
 0x19a   : > { %v4416_v13 = vpop.f32.mrf.mxu1 }
 0x19b   : > { %v1570_v21 = vpop.f32.mrf.mxu0 }
 0x19c   : > { %v1610_v22 = vpop.f32.mrf.mxu1 }
 0x19d   : > { %v1571_v24 = vpop.f32.mrf.mxu0  ;;  %v1451_v22 = vmul.f32 %v1449_v15, %v5102_v6 }
 0x19e   : > { %v4417_v19 = vpop.f32.mrf.mxu1 }
 0x19f   : > { %v1671_v23 = vpop.f32.mrf.mxu0 }
 0x1a0   : > { %v1712_v25 = vpop.f32.mrf.mxu1  ;;  %v1672_v9 = vadd.f32 %v1671_v23, %v1566_v17  ;;  %v1458_v23 = vpop.permute.xlu0 %1457 }
 0x1a1   : > { %v1673_v26 = vpop.f32.mrf.mxu0  ;;  %v1713_v12 = vadd.f32 %v1712_v25, %v1607_v18 }
 0x1a2   : > { %v4422_v28 = vpop.f32.mrf.mxu1  ;;  %v1674_v16 = vadd.f32 %v1673_v26, %v1568_v20  ;;  %v5113_v20 = vadd.f32 %v1458_v23, %v1451_v22 }
 0x1a3   : > { %v1675_v29 = vpop.f32.mrf.mxu0  ;;  %v1453_v28 = vmul.f32 %v1449_v15, %v5104_v8 }
 0x1a4   : > { %v1715_v30 = vpop.f32.mrf.mxu1 }
 0x1a5   : > { %v1676_v31 = vpop.f32.mrf.mxu0  ;;  %v5115_v6 = vadd.f32 %v1458_v23, %v1453_v28 }
 0x1a6   : > { %v4423_v27 = vpop.f32.mrf.mxu1 }
 0x1a7   : > { %v1778_v32 = vpop.f32.mrf.mxu0  ;;  %v1452_v27 = vmul.f32 %v1449_v15, %v5106_v10  ;;  %v5125_v15 = vpop.permute.xlu1 %2764 }
 0x1a8   : > { %v1819_v33 = vpop.f32.mrf.mxu1  ;;  %v1825_v13 = vadd.f32 %v1778_v32, %v1672_v9 }
 0x1a9   : > { %v1780_v34 = vpop.f32.mrf.mxu0  ;;  %v1827_v24 = vadd.f32 %v1819_v33, %v1713_v12 }
 0x1aa   : > { %v4428_v35 = vpop.f32.mrf.mxu1  ;;  %v1826_v29 = vadd.f32 %v1780_v34, %v1674_v16  ;;  %v5117_v34 = vadd.f32 %v1458_v23, %v1452_v27 }
 0x1ab   : > { %v1782_v36 = vpop.f32.mrf.mxu0  ;;  %v5129_v22 = vpop.permute.xlu1 %2768 }
 0x1ac   : > { %v1822_v37 = vpop.f32.mrf.mxu1 }
 0x1ad   : > { %v1783_v38 = vpop.f32.mrf.mxu0 }
 0x1ae   : > { %v4429_v39 = vpop.f32.mrf.mxu1 }
 0x1af   : > { %v1888_v40 = vpop.f32.mrf.mxu0 }
 0x1b0   : > { %v1929_v41 = vpop.f32.mrf.mxu1  ;;  %v1935_v30 = vadd.f32 %v1888_v40, %v1825_v13  ;;  %v5127_v13 = vpop.permute.xlu0 %2766 }
 0x1b1   : > { %v1890_v42 = vpop.f32.mrf.mxu0  ;;  %v1937_v35 = vadd.f32 %v1929_v41, %v1827_v24 }
 0x1b2   : > { %v4434_v43 = vpop.f32.mrf.mxu1  ;;  %v1936_v18 = vadd.f32 %v1890_v42, %v1826_v29  ;;  %v4183_v42 = vmul.f32 -1.442695, %v5113_v20 }
 0x1b3   : > { %v1892_v44 = vpop.f32.mrf.mxu0 }
 0x1b4   : > { %v1932_v45 = vpop.f32.mrf.mxu1  ;;  %4622 = vpow2.f32 %v4183_v42  ;;  %v2771_v28 = vpop.permute.xlu0 %2770 }
 0x1b5   : > { %v1893_v46 = vpop.f32.mrf.mxu0  ;;  %v4185_v45 = vmul.f32 -1.442695, %v5115_v6 }
 0x1b6   : > { %v4435_v47 = vpop.f32.mrf.mxu1 }
 0x1b7   : > { %v1997_v48 = vpop.f32.mrf.mxu0  ;;  %4624 = vpow2.f32 %v4185_v45 }
 0x1b8   : > { %v2038_v49 = vpop.f32.mrf.mxu1  ;;  %v2044_v25 = vadd.f32 %v1997_v48, %v1935_v30  ;;  %v5133_v23 = vpop.permute.xlu0 %2871 }
 0x1b9   : > { %v1999_v50 = vpop.f32.mrf.mxu0  ;;  %v2046_v26 = vadd.f32 %v2038_v49, %v1937_v35  ;;  %v4184_v49 = vmul.f32 -1.442695, %v5117_v34 }
 0x1ba   : > { %v4440_v51 = vpop.f32.mrf.mxu1  ;;  %v2045_v33 = vadd.f32 %v1999_v50, %v1936_v18 }
 0x1bb   : > { %v2001_v52 = vpop.f32.mrf.mxu0  ;;  %4626 = vpow2.f32 %v4184_v49 }
 0x1bc   : > { %v2041_v53 = vpop.f32.mrf.mxu1 }
 0x1bd   : > { %v2002_v54 = vpop.f32.mrf.mxu0 }
 0x1be   : > { %v4441_v55 = vpop.f32.mrf.mxu1 }
 0x1bf   : > { %v2107_v56 = vpop.f32.mrf.mxu0 }
 0x1c0   : > { %v2148_v57 = vpop.f32.mrf.mxu1  ;;  %v2154_v37 = vadd.f32 %v2107_v56, %v2044_v25 }
 0x1c1   : > { %v2109_v58 = vpop.f32.mrf.mxu0  ;;  %v2156_v38 = vadd.f32 %v2148_v57, %v2046_v26  ;;  %v2876_v26 = vpop.permute.xlu0 %2875 }
 0x1c2   : > { %v4446_v59 = vpop.f32.mrf.mxu1  ;;  %v2155_v10 = vadd.f32 %v2109_v58, %v2045_v33 }
 0x1c3   : > { %v2111_v60 = vpop.f32.mrf.mxu0 }
 0x1c4   : > { %v2151_v61 = vpop.f32.mrf.mxu1 }
 0x1c5   : > { %v2112_v62 = vpop.f32.mrf.mxu0 }
 0x1c6   : > { %v4447_v2 = vpop.f32.mrf.mxu1 }
 0x1c7   : > { %v2233_v3 = vpop.f32.mrf.mxu0 }
 0x1c8   : > { %v2274_v4 = vpop.f32.mrf.mxu1  ;;  %v2280_v40 = vadd.f32 %v2233_v3, %v2154_v37 }
 0x1c9   : > { %v2235_v5 = vpop.f32.mrf.mxu0  ;;  %v2282_v43 = vadd.f32 %v2274_v4, %v2156_v38 }
 0x1ca   : > { %v4452_v11 = vpop.f32.mrf.mxu1  ;;  %v2281_v46 = vadd.f32 %v2235_v5, %v2155_v10 }
 0x1cb   : > { %v2237_v14 = vpop.f32.mrf.mxu0 }
 0x1cc   : > { %v2277_v21 = vpop.f32.mrf.mxu1 }
 0x1cd   : > { %v2238_v19 = vpop.f32.mrf.mxu0  ;;  %v4623_v21 = vpop.eup %4622 }
 0x1ce   : > { %v4453_v31 = vpop.f32.mrf.mxu1  ;;  %v1472_v19 = vadd.f32 1.0, %v4623_v21 }
 0x1cf   : > { %v2343_v17 = vpop.f32.mrf.mxu0 }
 0x1d0   : > { %v2384_v36 = vpop.f32.mrf.mxu1  ;;  %v2390_v47 = vadd.f32 %v2343_v17, %v2280_v40 }
 0x1d1   : > { %v2345_v32 = vpop.f32.mrf.mxu0  ;;  %v2392_v50 = vadd.f32 %v2384_v36, %v2282_v43 }
 0x1d2   : > { %v4458_v8 = vpop.f32.mrf.mxu1  ;;  %v2391_v52 = vadd.f32 %v2345_v32, %v2281_v46 }
 0x1d3   : > { %v2347_v39 = vpop.f32.mrf.mxu0  ;;  %v5139_v8 = vpop.permute.xlu0 %2978 }
 0x1d4   : > { %v2387_v41 = vpop.f32.mrf.mxu1 }
 0x1d5   : > { %v2348_v44 = vpop.f32.mrf.mxu0 }
 0x1d6   : > { %v4459_v48 = vpop.f32.mrf.mxu1 }
 0x1d7   : > { %v2453_v51 = vpop.f32.mrf.mxu0  ;;  %v5146_v49 = vpop.permute.xlu0 %2982 }
 0x1d8   : > { %v2500_v53 = vadd.f32 %v2453_v51, %v2390_v47  ;;  %v2494_v54 = vpop.f32.mrf.mxu1 }
 0x1d9   : > { %v2502_v55 = vadd.f32 %v2494_v54, %v2392_v50  ;;  %v2455_v56 = vpop.f32.mrf.mxu0 }
 0x1da   : > { %v2509_v57 = vmul.f32 %v2507_v7, %v2500_v53  ;;  %v2501_v58 = vadd.f32 %v2455_v56, %v2391_v52  ;;  %v4464_v59 = vpop.f32.mrf.mxu1  ;;  %v4619_v53 = vld [vmem:[%s5363_s9] sm:$0x3f]   ;;  %v2774_v56 = vsel %vm2772_vm8, %v5127_v13, %v5129_v22 }
 0x1db   : > { %v2511_v60 = vmul.f32 %v2507_v7, %v2502_v55  ;;  %v2457_v61 = vpop.f32.mrf.mxu0 }
 0x1dc   : > { %v2518_v62 = vadd.f32 %v5108_v63, %v2509_v57  ;;  %v2510_v2 = vmul.f32 %v2507_v7, %v2501_v58  ;;  %v2497_v3 = vpop.f32.mrf.mxu1  ;;  %v4625_v7 = vpop.eup %4624 }
 0x1dd   : > { %v2520_v4 = vadd.f32 %v5108_v63, %v2511_v60  ;;  %v2458_v5 = vpop.f32.mrf.mxu0  ;;  %v4627_v24 = vpop.eup %4626  ;;  %v1474_v29 = vadd.f32 1.0, %v4625_v7  ;;  %v2775_v60 = vsel %vm2772_vm8, %v5129_v22, %v2771_v28 }
 0x1de   : > { %v4229_v9 = vmul.f32 -1.442695, %v2518_v62  ;;  %v2519_v11 = vadd.f32 %v5108_v63, %v2510_v2  ;;  %v4465_v12 = vpop.f32.mrf.mxu1  ;;  %v1473_v30 = vadd.f32 1.0, %v4627_v24  ;;  %v5131_v63 = vpop.permute.xlu1 %2869  ;;  %v4620_v2 = vld [vmem:[%s5362_s8] sm:$0x3f]   ;;  %v2786_v3 = vsel %vm479_vm2, %v2775_v60, 0 }
 0x1df   : > { %v4231_v14 = vmul.f32 -1.442695, %v2520_v4  ;;  %v5161_v57 = vpop.permute.xlu0 %3088 }
 0x1e0   : > { %4628 = vpow2.f32 %v4229_v9  ;;  %v4230_v16 = vmul.f32 -1.442695, %v2519_v11 }
 0x1e1   : > { %4630 = vpow2.f32 %v4231_v14  ;;  %v2878_v14 = vsel %vm2877_vm9, %v5131_v63, %v5133_v23 }
 0x1e2   : > { %4632 = vpow2.f32 %v4230_v16  ;;  %v5135_v36 = vpop.permute.xlu1 %2873  ;;  %v4240_v16 = vld [vmem:[%s5192_s23 + $0x2] sm:$0x3]  ;;  %v2885_v21 = vsel %vm479_vm2, %v2878_v14, 0  ;;  %v4275_v14 = vld [vmem:[%s5192_s23 + $0xe] sm:$0x3] }
 0x1e3   : > { %4634 = vrcp.f32 %v1472_v19  ;;  %v2879_v9 = vsel %vm2877_vm9, %v5133_v23, %v5135_v36  ;;  %v2880_v12 = vsel %vm2877_vm9, %v5135_v36, %v2876_v26 }
 0x1e4   : > { %4636 = vrcp.f32 %v1474_v29 }
 0x1e5   : > { %4638 = vrcp.f32 %v1473_v30  ;;  %v2751_v30 = vld [vmem:[%s5192_s23] sm:$0x3] }
 0x1e6   : > { %v5137_v32 = vpop.permute.xlu1 %2976 }
 0x1e7   : > { %v2985_v28 = vsel %vm2984_vm10, %v5137_v32, %v5139_v8 }
 0x1ea   : > { %v5141_v40 = vpop.permute.xlu1 %2980 }
 0x1eb   : > { %v2986_v7 = vsel %vm2984_vm10, %v5139_v8, %v5141_v40  ;;  %v2987_v19 = vsel %vm2984_vm10, %v5141_v40, %v5146_v49 }
 0x1ec   : > { %v2998_v63 = vsel %vm479_vm2, %v2987_v19, 0  ;;  %v3984_v19 = vld [vmem:[%s4795_s22] sm:$0xff] }
 0x1ed   : > { %v4629_v31 = vpop.eup %4628 }
 0x1ee   : > { %v4631_v27 = vpop.eup %4630  ;;  %v2530_v35 = vadd.f32 1.0, %v4629_v31  ;;  %v2992_v31 = vsel %vm479_vm2, %v2985_v28, 0  ;;  %v4682_v28 = vld [vmem:[%s4795_s22 + $0x1c] sm:$0x33] }
 0x1ef   : > { %v4633_v17 = vpop.eup %4632  ;;  %v2532_v18 = vadd.f32 1.0, %v4631_v27 }
 0x1f0   : > { %4640 = vrcp.f32 %v2530_v35  ;;  %v2531_v25 = vadd.f32 1.0, %v4633_v17  ;;  %v4635_v33 = vpop.eup %4634 }
 0x1f1   : > { %4642 = vrcp.f32 %v2532_v18  ;;  %v4637_v37 = vpop.eup %4636  ;;  %v1481_v48 = vmul.f32 %v4635_v33, %v5113_v20 }
 0x1f2   : > { %4644 = vrcp.f32 %v2531_v25  ;;  %v4639_v38 = vpop.eup %4638  ;;  %v1483_v44 = vmul.f32 %v4637_v37, %v5115_v6  ;;  %v5152_v6 = vpop.permute.xlu1 %3086  ;;  %v4251_v25 = vld [vmem:[%s5192_s23 + $0x4] sm:$0x3] }
 0x1f3   : > { %v1482_v45 = vmul.f32 %v4639_v38, %v5117_v34  ;;  %v1486_v34 = vpack.c.bf16 %v1481_v48, %v1481_v48  ;;  %v3095_v18 = vsel %vm3094_vm11, %v5152_v6, %v5161_v57  ;;  %v4259_v48 = vld [vmem:[%s5192_s23 + $0x8] sm:$0x3]  ;;  %v4263_v6 = vld [vmem:[%s5192_s23 + $0xa] sm:$0x3] }
 0x1f4   : > { %v1488_v54 = vpack.c.bf16 %v1483_v44, %v1483_v44  ;;  %v3102_v32 = vsel %vm479_vm2, %v3095_v18, 0  ;;  %v3986_v18 = vunpack.c.l.bf16 %v3984_v19 }
 0x1f5   : > { %v1487_v55 = vpack.c.bf16 %v1482_v45, %v1482_v45  ;;  %v2657_v59 = vsel %vm479_vm2, %v1486_v34, 0 }
 0x1f6   : > { %v2663_v58 = vsel %vm479_vm2, %v1488_v54, 0  ;;  %v3091_v61 = vpop.permute.xlu1 %3090 }
 0x1f7   : > { %v3096_v27 = vsel %vm3094_vm11, %v5161_v57, %v3091_v61 }
 0x1fd   : > { %v4641_v39 = vpop.eup %4640 }
 0x1fe   : > { %v4643_v10 = vpop.eup %4642  ;;  %v2539_v41 = vmul.f32 %v4641_v39, %v2518_v62  ;;  %v2773_v62 = vsel %vm2772_vm8, %v5125_v15, %v5127_v13  ;;  %v2891_v13 = vsel %vm479_vm2, %v2880_v12, 0 }
 0x1ff   : > { %v4645_v42 = vpop.eup %4644  ;;  %v2541_v43 = vmul.f32 %v4643_v10, %v2520_v4  ;;  %v3093_v4 = vpop.permute.xlu0 %3092  ;;  %v2780_v5 = vsel %vm479_vm2, %v2773_v62, 0  ;;  %v4255_v10 = vld [vmem:[%s5192_s23 + $0x6] sm:$0x3]  ;;  %v4267_v62 = vld [vmem:[%s5192_s23 + $0xc] sm:$0x3] }
 0x200   : > { %v2540_v46 = vmul.f32 %v4645_v42, %v2519_v11  ;;  %v2544_v47 = vpack.c.bf16 %v2539_v41, %v2539_v41  ;;  %v3197_v11 = vpop.permute.xlu1 %3196  ;;  %v3097_v17 = vsel %vm3094_vm11, %v3091_v61, %v3093_v4 }
 0x201   : > { %v2546_v50 = vpack.c.bf16 %v2541_v43, %v2541_v43  ;;  %v3108_v36 = vsel %vm479_vm2, %v3097_v17, 0 }
 0x202   : > { %v2545_v51 = vpack.c.bf16 %v2540_v46, %v2540_v46  ;;  %v2556_v20 = vsel %vm479_vm2, %v2544_v47, 0 }
 0x203   : > { %v2562_v52 = vsel %vm479_vm2, %v2546_v50, 0  ;;  %v3199_v15 = vpop.permute.xlu0 %3198 }
 0x204   : > { %4467 = vmatpush3.bf16.msra.mxu1 %v2562_v52  ;;  %4233 = vmatprep.subr.msk.bf16.mxu0 %vm479_vm2, %v2545_v51  ;;  %v3201_v22 = vpop.permute.xlu1 %3200  ;;  %v3204_v38 = vsel %vm905_vm7, %v3197_v11, %v3199_v15 }
 0x205   : > { %2579 = vmatpush1.bf16.msra.mxu0 %v2556_v20  ;;  %4472 = vmatprep.subr.bf16.mxu1 %v4692_v0  ;;  %v3205_v33 = vsel %vm905_vm7, %v3199_v15, %v3201_v22  ;;  %v3211_v41 = vsel %vm479_vm2, %v3204_v38, 0 }
 0x206   : > { %4237 = vmatprep.subr.msk.bf16.mxu0 %vm479_vm2, %v1487_v55 }
 0x207   : > { %4469 = vmatmul.mubr.msk.bf16.vlgmr.msra.gmra.mxu1 %vm475_vm3, %v4619_v53  ;;  %v3203_v24 = vpop.permute.xlu0 %3202 }
 0x208   : > { %4473 = vmatpush3.bf16.msra.mxu1 %v2663_v58  ;;  %4234 = vmatmul.mubr.msk.bf16.vlgmr.msra.gmra.mxu0 %vm475_vm3, %v4619_v53  ;;  %v3306_v29 = vpop.permute.xlu1 %3305  ;;  %v3206_v8 = vsel %vm905_vm7, %v3201_v22, %v3203_v24  ;;  %v3985_v24 = vld [vmem:[%s4795_s22 + $0x8] sm:$0xff] }
 0x209   : > { %2680 = vmatpush1.bf16.msra.mxu0 %v2657_v59  ;;  %4474 = vmatprep.mubr.msk.bf16.mxu1 %vm4694_vm0, %v4692_v0  ;;  %v3217_v40 = vsel %vm479_vm2, %v3206_v8, 0  ;;  %v3988_v17 = vunpack.c.l.bf16 %v3985_v24 }
 0x20a   : > { %2697 = vmatprep.mubr.bf16.mxu0 %v4693_v1  ;;  %4245 = vmatprep.subr.msk.bf16.mxu0 %vm479_vm2, %v2774_v56 }
 0x20b   : > { %4478 = vmatprep.subr.bf16.mxu1 %v4692_v0  ;;  %v3308_v35 = vpop.permute.xlu0 %3307 }
 0x20c   : > { %v3310_v23 = vpop.permute.xlu1 %3309  ;;  %v3314_v46 = vsel %vm3313_vm12, %v3306_v29, %v3308_v35  ;;  %v3992_v29 = vunpack.c.l.bf16 %v4682_v28 }
 0x20d   : > { %v3315_v43 = vsel %vm3313_vm12, %v3308_v35, %v3310_v23  ;;  %v3321_v50 = vsel %vm479_vm2, %v3314_v46, 0 }
 0x20f   : > { %4475 = vmatmul.mubr.msk.bf16.vlgmr.msra.gmra.mxu1 %vm475_vm3, %v4620_v2  ;;  %v3312_v26 = vpop.permute.xlu0 %3311 }
 0x210   : > { %4238 = vmatmul.mubr.msk.bf16.vlgmr.msra.gmra.mxu0 %vm475_vm3, %v4620_v2  ;;  %4479 = vmatpush3.bf16.msra.mxu1 %v2786_v3  ;;  %v3428_v37 = vpop.permute.xlu1 %3427  ;;  %v3316_v45 = vsel %vm3313_vm12, %v3310_v23, %v3312_v26  ;;  %v3989_v23 = vunpack.c.h.bf16 %v3985_v24 }
 0x211   : > { %2803 = vmatpush1.bf16.msra.mxu0 %v2780_v5  ;;  %4480 = vmatprep.mubr.msk.bf16.mxu1 %vm4694_vm0, %v4692_v0  ;;  %v3327_v49 = vsel %vm479_vm2, %v3316_v45, 0 }
 0x212   : > { %2820 = vmatprep.mubr.bf16.mxu0 %v4693_v1  ;;  %4248 = vmatprep.subr.msk.bf16.mxu0 %vm479_vm2, %v2879_v9  ;;  %v4584_v26 = vpack.i.bf16 %v3989_v23, %v3988_v17 }
 0x213   : > { %4484 = vmatprep.subr.bf16.mxu1 %v4692_v0  ;;  %v3430_v39 = vpop.permute.xlu0 %3429 }
 0x214   : > { %v3432_v42 = vpop.permute.xlu1 %3431  ;;  %v3436_v55 = vsel %vm3435_vm13, %v3428_v37, %v3430_v39  ;;  %4585 = vrot.lane.b32.xlu0 %v4584_v26, %s4699_s27 }
 0x215   : > { %v3437_v51 = vsel %vm3435_vm13, %v3430_v39, %v3432_v42  ;;  %v3443_v56 = vsel %vm479_vm2, %v3436_v55, 0 }
 0x217   : > { %4481 = vmatmul.mubr.msk.bf16.vlgmr.msra.gmra.mxu1 %vm475_vm3, %v4240_v16  ;;  %v3434_v44 = vpop.permute.xlu0 %3433 }
 0x218   : > { %4246 = vmatmul.mubr.msk.bf16.vlgmr.msra.gmra.mxu0 %vm475_vm3, %v4240_v16  ;;  %4485 = vmatpush3.bf16.msra.mxu1 %v2891_v13  ;;  %v3538_v47 = vpop.permute.xlu1 %3537  ;;  %v3438_v53 = vsel %vm3435_vm13, %v3432_v42, %v3434_v44  ;;  %v4279_v13 = vld [vmem:[%s5192_s23 + $0x10] sm:$0x3] }
 0x219   : > { %2908 = vmatpush1.bf16.msra.mxu0 %v2885_v21  ;;  %4486 = vmatprep.mubr.msk.bf16.mxu1 %vm4694_vm0, %v4692_v0  ;;  %v3449_v20 = vsel %vm479_vm2, %v3438_v53, 0 }
 0x21a   : > { %2925 = vmatprep.mubr.bf16.mxu0 %v4693_v1  ;;  %4252 = vmatprep.subr.msk.bf16.mxu0 %vm479_vm2, %v2986_v7 }
 0x21b   : > { %4490 = vmatprep.subr.bf16.mxu1 %v4692_v0  ;;  %v3540_v52 = vpop.permute.xlu0 %3539 }
 0x21c   : > { %v3542_v54 = vpop.permute.xlu1 %3541  ;;  %v3546_v60 = vsel %vm3545_vm14, %v3538_v47, %v3540_v52 }
 0x21d   : > { %v3547_v57 = vsel %vm3545_vm14, %v3540_v52, %v3542_v54  ;;  %v3553_v3 = vsel %vm479_vm2, %v3546_v60, 0 }
 0x21f   : > { %4487 = vmatmul.mubr.msk.bf16.vlgmr.msra.gmra.mxu1 %vm475_vm3, %v2751_v30  ;;  %v3544_v34 = vpop.permute.xlu0 %3543 }
 0x220   : > { %4249 = vmatmul.mubr.msk.bf16.vlgmr.msra.gmra.mxu0 %vm475_vm3, %v2751_v30  ;;  %4491 = vmatpush3.bf16.msra.mxu1 %v2998_v63  ;;  %v3648_v58 = vpop.permute.xlu1 %3647  ;;  %v3548_v59 = vsel %vm3545_vm14, %v3542_v54, %v3544_v34  ;;  %v3993_v30 = vunpack.c.h.bf16 %v4682_v28  ;;  %v4683_v63 = vld [vmem:[%s4795_s22 + $0x14] sm:$0x33] }
 0x221   : > { %3015 = vmatpush1.bf16.msra.mxu0 %v2992_v31  ;;  %4492 = vmatprep.mubr.msk.bf16.mxu1 %vm4694_vm0, %v4692_v0  ;;  %v3559_v2 = vsel %vm479_vm2, %v3548_v59, 0  ;;  %v3990_v31 = vunpack.c.l.bf16 %v4683_v63 }
 0x222   : > { %3032 = vmatprep.mubr.bf16.mxu0 %v4693_v1  ;;  %4256 = vmatprep.subr.msk.bf16.mxu0 %vm479_vm2, %v3096_v27  ;;  %v3991_v27 = vunpack.c.h.bf16 %v4683_v63  ;;  %v4594_v37 = vpack.i.bf16 %v3993_v30, %v3992_v29 }
 0x223   : > { %4496 = vmatprep.subr.bf16.mxu1 %v4692_v0  ;;  %v3650_v61 = vpop.permute.xlu0 %3649 }
 0x224   : > { %v3652_v4 = vpop.permute.xlu1 %3651  ;;  %v3656_v12 = vsel %vm3655_vm15, %v3648_v58, %v3650_v61  ;;  %v4589_v8 = vpack.i.bf16 %v3991_v27, %v3990_v31  ;;  %4595 = vrot.lane.b32.xlu0 %v4594_v37, %s4699_s27 }
 0x225   : > { %v3657_v5 = vsel %vm3655_vm15, %v3650_v61, %v3652_v4  ;;  %v3663_v16 = vsel %vm479_vm2, %v3656_v12, 0 }
 0x227   : > { %4493 = vmatmul.mubr.msk.bf16.vlgmr.msra.gmra.mxu1 %vm475_vm3, %v4251_v25  ;;  %v3654_v9 = vpop.permute.xlu0 %3653 }
 0x228   : > { %4253 = vmatmul.mubr.msk.bf16.vlgmr.msra.gmra.mxu0 %vm475_vm3, %v4251_v25  ;;  %4497 = vmatpush3.bf16.msra.mxu1 %v3108_v36  ;;  %v3658_v11 = vsel %vm3655_vm15, %v3652_v4, %v3654_v9  ;;  %v3987_v25 = vunpack.c.h.bf16 %v3984_v19 }
 0x229   : > { %3125 = vmatpush1.bf16.msra.mxu0 %v3102_v32  ;;  %4498 = vmatprep.mubr.msk.bf16.mxu1 %vm4694_vm0, %v4692_v0  ;;  %v3669_v15 = vsel %vm479_vm2, %v3658_v11, 0 }
 0x22a   : > { %3142 = vmatprep.mubr.bf16.mxu0 %v4693_v1  ;;  %4260 = vmatprep.subr.msk.bf16.mxu0 %vm479_vm2, %v3205_v33 }
 0x22b   : > { %4502 = vmatprep.subr.bf16.mxu1 %v4692_v0 }
 0x22f   : > { %4499 = vmatmul.mubr.msk.bf16.vlgmr.msra.gmra.mxu1 %vm475_vm3, %v4255_v10 }
 0x230   : > { %4257 = vmatmul.mubr.msk.bf16.vlgmr.msra.gmra.mxu0 %vm475_vm3, %v4255_v10  ;;  %4503 = vmatpush3.bf16.msra.mxu1 %v3217_v40 }
 0x231   : > { %3234 = vmatpush1.bf16.msra.mxu0 %v3211_v41  ;;  %4504 = vmatprep.mubr.msk.bf16.mxu1 %vm4694_vm0, %v4692_v0 }
 0x232   : > { %3251 = vmatprep.mubr.bf16.mxu0 %v4693_v1  ;;  %4264 = vmatprep.subr.msk.bf16.mxu0 %vm479_vm2, %v3315_v43 }
 0x233   : > { %4508 = vmatprep.subr.bf16.mxu1 %v4692_v0 }
 0x237   : > { %4505 = vmatmul.mubr.msk.bf16.vlgmr.msra.gmra.mxu1 %vm475_vm3, %v4259_v48 }
 0x238   : > { %4261 = vmatmul.mubr.msk.bf16.vlgmr.msra.gmra.mxu0 %vm475_vm3, %v4259_v48  ;;  %4509 = vmatpush3.bf16.msra.mxu1 %v3327_v49 }
 0x239   : > { %3344 = vmatpush1.bf16.msra.mxu0 %v3321_v50  ;;  %4510 = vmatprep.mubr.msk.bf16.mxu1 %vm4694_vm0, %v4692_v0 }
 0x23a   : > { %3361 = vmatprep.mubr.bf16.mxu0 %v4693_v1  ;;  %4272 = vmatprep.subr.msk.bf16.mxu0 %vm479_vm2, %v3437_v51 }
 0x23b   : > { %4514 = vmatprep.subr.bf16.mxu1 %v4692_v0 }
 0x23f   : > { %4511 = vmatmul.mubr.msk.bf16.vlgmr.msra.gmra.mxu1 %vm475_vm3, %v4263_v6 }
 0x240   : > { %4265 = vmatmul.mubr.msk.bf16.vlgmr.msra.gmra.mxu0 %vm475_vm3, %v4263_v6  ;;  %4515 = vmatpush3.bf16.msra.mxu1 %v3449_v20 }
 0x241   : > { %3466 = vmatpush1.bf16.msra.mxu0 %v3443_v56  ;;  %4516 = vmatprep.mubr.msk.bf16.mxu1 %vm4694_vm0, %v4692_v0 }
 0x242   : > { %3483 = vmatprep.mubr.bf16.mxu0 %v4693_v1  ;;  %4276 = vmatprep.subr.msk.bf16.mxu0 %vm479_vm2, %v3547_v57 }
 0x243   : > { %4520 = vmatprep.subr.bf16.mxu1 %v4692_v0 }
 0x247   : > { %4517 = vmatmul.mubr.msk.bf16.vlgmr.msra.gmra.mxu1 %vm475_vm3, %v4267_v62 }
 0x248   : > { %4273 = vmatmul.mubr.msk.bf16.vlgmr.msra.gmra.mxu0 %vm475_vm3, %v4267_v62  ;;  %4521 = vmatpush3.bf16.msra.mxu1 %v3559_v2 }
 0x249   : > { %3576 = vmatpush1.bf16.msra.mxu0 %v3553_v3  ;;  %4522 = vmatprep.mubr.msk.bf16.mxu1 %vm4694_vm0, %v4692_v0 }
 0x24a   : > { %3593 = vmatprep.mubr.bf16.mxu0 %v4693_v1  ;;  %4280 = vmatprep.subr.msk.bf16.mxu0 %vm479_vm2, %v3657_v5 }
 0x24b   : > { %4526 = vmatprep.subr.bf16.mxu1 %v4692_v0 }
 0x24f   : > { %4523 = vmatmul.mubr.msk.bf16.vlgmr.msra.gmra.mxu1 %vm475_vm3, %v4275_v14 }
 0x250   : > { %4277 = vmatmul.mubr.msk.bf16.vlgmr.msra.gmra.mxu0 %vm475_vm3, %v4275_v14  ;;  %4527 = vmatpush3.bf16.msra.mxu1 %v3669_v15 }
 0x251   : > { %3686 = vmatpush1.bf16.msra.mxu0 %v3663_v16  ;;  %4528 = vmatprep.mubr.msk.bf16.mxu1 %vm4694_vm0, %v4692_v0 }
 0x252   : > { %3703 = vmatprep.mubr.bf16.mxu0 %v4693_v1  ;;  %4532 = vmatprep.subr.bf16.mxu1 %v4692_v0 }
 0x257   : > { %4529 = vmatmul.mubr.msk.bf16.vlgmr.msra.gmra.mxu1 %vm475_vm3, %v4279_v13 }
 0x258   : > { %4281 = vmatmul.mubr.msk.bf16.vlgmr.msra.gmra.mxu0 %vm475_vm3, %v4279_v13  ;;  %4534 = vmatprep.mubr.msk.bf16.mxu1 %vm4694_vm0, %v4692_v0 }
 0x259   : > { %3848 = vmatprep.mubr.bf16.mxu0 %v4693_v1  ;;  %v4579_v1 = vpack.i.bf16 %v3987_v25, %v3986_v18 }
 0x25b   : > { %4580 = vrot.lane.b32.xlu1 %v4579_v1, %s4699_s27 }
 0x25f   : > { %4590 = vrot.lane.b32.xlu1 %v4589_v8, %s4699_s27 }
 0x2c7   : > { %v2641_v21 = vpop.f32.mrf.mxu1 }
 0x2c8   : > { %v2598_v22 = vpop.f32.mrf.mxu0 }
 0x2c9   : > { %v4470_v7 = vpop.f32.mrf.mxu1 }
 0x2ca   : > { %v2600_v35 = vpop.f32.mrf.mxu0 }
 0x2cb   : > { %v2644_v36 = vpop.f32.mrf.mxu1 }
 0x2cc   : > { %v2602_v0 = vpop.f32.mrf.mxu0 }
 0x2cd   : > { %v4471_v32 = vpop.f32.mrf.mxu1 }
 0x2ce   : > { %v2604_v33 = vpop.f32.mrf.mxu0 }
 0x2cf   : > { %v2742_v38 = vpop.f32.mrf.mxu1 }
 0x2d0   : > { %v5309_v39 = vadd.f32 %v2742_v38, %v2641_v21  ;;  %v2699_v10 = vpop.f32.mrf.mxu0 }
 0x2d1   : > { %v5311_v40 = vadd.f32 %v2699_v10, %v2598_v22  ;;  %v4476_v41 = vpop.f32.mrf.mxu1 }
 0x2d2   : > { %v2701_v42 = vpop.f32.mrf.mxu0 }
 0x2d3   : > { %v5315_v43 = vadd.f32 %v2701_v42, %v2600_v35  ;;  %v2745_v44 = vpop.f32.mrf.mxu1 }
 0x2d4   : > { %v5317_v45 = vadd.f32 %v2745_v44, %v2644_v36  ;;  %v2703_v46 = vpop.f32.mrf.mxu0 }
 0x2d5   : > { %v5319_v47 = vadd.f32 %v2703_v46, %v2602_v0  ;;  %v4477_v48 = vpop.f32.mrf.mxu1 }
 0x2d6   : > { %v2705_v49 = vpop.f32.mrf.mxu0 }
 0x2d7   : > { %v5321_v50 = vadd.f32 %v2705_v49, %v2604_v33  ;;  %v2863_v51 = vpop.f32.mrf.mxu1 }
 0x2d8   : > { %v2822_v52 = vpop.f32.mrf.mxu0 }
 0x2d9   : > { %v4482_v53 = vpop.f32.mrf.mxu1 }
 0x2da   : > { %v2824_v54 = vpop.f32.mrf.mxu0 }
 0x2db   : > { %v2866_v55 = vpop.f32.mrf.mxu1 }
 0x2dc   : > { %v2826_v6 = vpop.f32.mrf.mxu0 }
 0x2dd   : > { %v4483_v20 = vpop.f32.mrf.mxu1 }
 0x2de   : > { %v2827_v34 = vpop.f32.mrf.mxu0 }
 0x2df   : > { %v2968_v56 = vpop.f32.mrf.mxu1 }
 0x2e0   : > { %v2927_v57 = vpop.f32.mrf.mxu0  ;;  %v2969_v10 = vadd.f32 %v2968_v56, %v2863_v51 }
 0x2e1   : > { %v4488_v58 = vpop.f32.mrf.mxu1  ;;  %v2928_v42 = vadd.f32 %v2927_v57, %v2822_v52 }
 0x2e2   : > { %v2929_v59 = vpop.f32.mrf.mxu0 }
 0x2e3   : > { %v2971_v60 = vpop.f32.mrf.mxu1  ;;  %v2930_v49 = vadd.f32 %v2929_v59, %v2824_v54 }
 0x2e4   : > { %v2931_v61 = vpop.f32.mrf.mxu0 }
 0x2e5   : > { %v4489_v62 = vpop.f32.mrf.mxu1 }
 0x2e6   : > { %v2932_v2 = vpop.f32.mrf.mxu0 }
 0x2e7   : > { %v3075_v3 = vpop.f32.mrf.mxu1 }
 0x2e8   : > { %v3034_v4 = vpop.f32.mrf.mxu0  ;;  %v3083_v46 = vadd.f32 %v3075_v3, %v2969_v10 }
 0x2e9   : > { %v4494_v5 = vpop.f32.mrf.mxu1  ;;  %v3081_v53 = vadd.f32 %v3034_v4, %v2928_v42 }
 0x2ea   : > { %v3036_v9 = vpop.f32.mrf.mxu0 }
 0x2eb   : > { %v3078_v11 = vpop.f32.mrf.mxu1  ;;  %v3082_v34 = vadd.f32 %v3036_v9, %v2930_v49 }
 0x2ec   : > { %v3038_v12 = vpop.f32.mrf.mxu0 }
 0x2ed   : > { %v4495_v14 = vpop.f32.mrf.mxu1 }
 0x2ee   : > { %v3039_v15 = vpop.f32.mrf.mxu0 }
 0x2ef   : > { %v3185_v16 = vpop.f32.mrf.mxu1 }
 0x2f0   : > { %v3144_v13 = vpop.f32.mrf.mxu0  ;;  %v3193_v6 = vadd.f32 %v3185_v16, %v3083_v46 }
 0x2f1   : > { %v4500_v21 = vpop.f32.mrf.mxu1  ;;  %v3191_v58 = vadd.f32 %v3144_v13, %v3081_v53 }
 0x2f2   : > { %v3146_v22 = vpop.f32.mrf.mxu0 }
 0x2f3   : > { %v3188_v7 = vpop.f32.mrf.mxu1  ;;  %v3192_v2 = vadd.f32 %v3146_v22, %v3082_v34  ;;  %v3759_v22 = vpop.permute.xlu1 %3758 }
 0x2f4   : > { %v3148_v24 = vpop.f32.mrf.mxu0 }
 0x2f5   : > { %v4501_v19 = vpop.f32.mrf.mxu1 }
 0x2f6   : > { %v3149_v28 = vpop.f32.mrf.mxu0 }
 0x2f7   : > { %v3294_v29 = vpop.f32.mrf.mxu1 }
 0x2f8   : > { %v3253_v30 = vpop.f32.mrf.mxu0  ;;  %v3302_v61 = vadd.f32 %v3294_v29, %v3193_v6 }
 0x2f9   : > { %v4506_v63 = vpop.f32.mrf.mxu1  ;;  %v3300_v5 = vadd.f32 %v3253_v30, %v3191_v58 }
 0x2fa   : > { %v3255_v31 = vpop.f32.mrf.mxu0 }
 0x2fb   : > { %v3297_v27 = vpop.f32.mrf.mxu1  ;;  %v3301_v56 = vadd.f32 %v3255_v31, %v3192_v2  ;;  %v3768_v31 = vpop.permute.xlu0 %3767 }
 0x2fc   : > { %v3257_v35 = vpop.f32.mrf.mxu0  ;;  %v3911_v2 = vpop.permute.xlu1 %3910 }
 0x2fd   : > { %v4507_v17 = vpop.f32.mrf.mxu1 }
 0x2fe   : > { %v3258_v23 = vpop.f32.mrf.mxu0 }
 0x2ff   : > { %v3404_v18 = vpop.f32.mrf.mxu1 }
 0x300   : > { %v3363_v25 = vpop.f32.mrf.mxu0  ;;  %v3412_v12 = vadd.f32 %v3404_v18, %v3302_v61 }
 0x301   : > { %v4512_v36 = vpop.f32.mrf.mxu1  ;;  %v3410_v52 = vadd.f32 %v3363_v25, %v3300_v5 }
 0x302   : > { %v3365_v0 = vpop.f32.mrf.mxu0 }
 0x303   : > { %v3407_v26 = vpop.f32.mrf.mxu1  ;;  %v3411_v54 = vadd.f32 %v3365_v0, %v3301_v56 }
 0x304   : > { %v3367_v1 = vpop.f32.mrf.mxu0 }
 0x305   : > { %v4513_v32 = vpop.f32.mrf.mxu1 }
 0x306   : > { %v3368_v33 = vpop.f32.mrf.mxu0 }
 0x307   : > { %v3526_v37 = vpop.f32.mrf.mxu1 }
 0x308   : > { %v3485_v8 = vpop.f32.mrf.mxu0  ;;  %v3534_v3 = vadd.f32 %v3526_v37, %v3412_v12  ;;  %v3916_v12 = vpop.permute.xlu0 %3915 }
 0x309   : > { %v4518_v38 = vpop.f32.mrf.mxu1  ;;  %v3532_v59 = vadd.f32 %v3485_v8, %v3410_v52 }
 0x30a   : > { %v3487_v41 = vpop.f32.mrf.mxu0 }
 0x30b   : > { %v3529_v44 = vpop.f32.mrf.mxu1  ;;  %v3533_v9 = vadd.f32 %v3487_v41, %v3411_v54 }
 0x30c   : > { %v3489_v48 = vpop.f32.mrf.mxu0 }
 0x30d   : > { %v4519_v55 = vpop.f32.mrf.mxu1 }
 0x30e   : > { %v3490_v20 = vpop.f32.mrf.mxu0 }
 0x30f   : > { %v3636_v60 = vpop.f32.mrf.mxu1 }
 0x310   : > { %v3595_v62 = vpop.f32.mrf.mxu0  ;;  %v3644_v15 = vadd.f32 %v3636_v60, %v3534_v3  ;;  %v4621_v60 = vld [vmem:[%s5364_s10] sm:$0x3f]  }
 0x311   : > { %v4524_v11 = vpop.f32.mrf.mxu1  ;;  %v3642_v13 = vadd.f32 %v3595_v62, %v3532_v59 }
 0x312   : > { %v3597_v51 = vpop.f32.mrf.mxu0 }
 0x313   : > { %v3639_v57 = vpop.f32.mrf.mxu1  ;;  %v3643_v19 = vadd.f32 %v3597_v51, %v3533_v9 }
 0x314   : > { %v3599_v14 = vpop.f32.mrf.mxu0  ;;  %v3929_v57 = vpop.permute.xlu1 %3928 }
 0x315   : > { %v4525_v4 = vpop.f32.mrf.mxu1 }
 0x316   : > { %v3600_v16 = vpop.f32.mrf.mxu0 }
 0x317   : > { %v3746_v21 = vpop.f32.mrf.mxu1 }
 0x318   : > { %v3754_v7 = vadd.f32 %v3746_v21, %v3644_v15  ;;  %v3705_v24 = vpop.f32.mrf.mxu0 }
 0x319   : > { %v3752_v28 = vadd.f32 %v3705_v24, %v3642_v13  ;;  %v4530_v29 = vpop.f32.mrf.mxu1 }
 0x31a   : > { %v3763_v30 = vmul.f32 %v3759_v22, %v3754_v7  ;;  %v3707_v63 = vpop.f32.mrf.mxu0  ;;  %v3934_v7 = vpop.permute.xlu0 %3933 }
 0x31b   : > { %v3761_v27 = vmul.f32 %v3759_v22, %v3752_v28  ;;  %v3753_v35 = vadd.f32 %v3707_v63, %v3643_v19  ;;  %v3749_v17 = vpop.f32.mrf.mxu1 }
 0x31c   : > { %v3772_v23 = vadd.f32 %v3768_v31, %v3763_v30  ;;  %v3709_v18 = vpop.f32.mrf.mxu0 }
 0x31d   : > { %v3770_v25 = vadd.f32 %v3768_v31, %v3761_v27  ;;  %v3762_v36 = vmul.f32 %v3759_v22, %v3753_v35  ;;  %v4531_v0 = vpop.f32.mrf.mxu1 }
 0x31e   : > { %v4285_v26 = vmul.f32 -1.442695, %v3772_v23  ;;  %v3710_v1 = vpop.f32.mrf.mxu0 }
 0x31f   : > { %v4283_v32 = vmul.f32 -1.442695, %v3770_v25  ;;  %v3771_v33 = vadd.f32 %v3768_v31, %v3762_v36 }
 0x320   : > { %4646 = vpow2.f32 %v4285_v26 }
 0x321   : > { %4648 = vpow2.f32 %v4283_v32  ;;  %v4284_v37 = vmul.f32 -1.442695, %v3771_v33 }
 0x323   : > { %4650 = vpow2.f32 %v4284_v37  ;;  %v4586_v37 = vpop.permute.xlu0 %4585 }
 0x32d   : > { %v4647_v8 = vpop.eup %4646 }
 0x32e   : > { %v4649_v38 = vpop.eup %4648  ;;  %v3784_v10 = vadd.f32 1.0, %v4647_v8 }
 0x32f   : > { %v3782_v41 = vadd.f32 1.0, %v4649_v38 }
 0x330   : > { %v4651_v42 = vpop.eup %4650  ;;  %4652 = vrcp.f32 %v3784_v10 }
 0x331   : > { %4654 = vrcp.f32 %v3782_v41  ;;  %v3783_v44 = vadd.f32 1.0, %v4651_v42  ;;  %v4581_v41 = vpop.permute.xlu1 %4580  ;;  %v4588_v42 = vunpack.i.h.bf16 %v4586_v37 }
 0x333   : > { %4656 = vrcp.f32 %v3783_v44  ;;  %v4587_v44 = vunpack.i.l.bf16 %v4586_v37 }
 0x33d   : > { %v4653_v46 = vpop.eup %4652 }
 0x33e   : > { %v4655_v48 = vpop.eup %4654  ;;  %v3793_v49 = vmul.f32 %v4653_v46, %v3772_v23  ;;  %v4596_v46 = vpop.permute.xlu0 %4595 }
 0x33f   : > { %v3791_v53 = vmul.f32 %v4655_v48, %v3770_v25  ;;  %v4583_v48 = vunpack.i.h.bf16 %v4581_v41 }
 0x340   : > { %v4657_v55 = vpop.eup %4656  ;;  %v3798_v6 = vpack.c.bf16 %v3793_v49, %v3793_v49  ;;  %v4582_v49 = vunpack.i.l.bf16 %v4581_v41 }
 0x341   : > { %v3792_v20 = vmul.f32 %v4657_v55, %v3771_v33  ;;  %v3796_v34 = vpack.c.bf16 %v3791_v53, %v3791_v53  ;;  %v4021_v55 = vsel %vm905_vm7, %v4587_v44, %v4588_v42 }
 0x342   : > { %v3814_v58 = vsel %vm479_vm2, %v3798_v6, 0  ;;  %v4598_v6 = vunpack.i.h.bf16 %v4596_v46 }
 0x343   : > { %v3797_v61 = vpack.c.bf16 %v3792_v20, %v3792_v20  ;;  %4533 = vmatpush3.bf16.msra.mxu1 %v3814_v58  ;;  %v3808_v62 = vsel %vm479_vm2, %v3796_v34, 0  ;;  %v4597_v20 = vunpack.i.l.bf16 %v4596_v46  ;;  %v4591_v34 = vpop.permute.xlu1 %4590 }
 0x345   : > { %4287 = vmatprep.subr.msk.bf16.mxu0 %vm479_vm2, %v3797_v61 }
 0x346   : > { %4535 = vmatmul.mubr.msk.bf16.vlgmr.msra.gmra.mxu1 %vm475_vm3, %v4621_v60  ;;  %3831 = vmatpush1.bf16.msra.mxu0 %v3808_v62  ;;  %v4019_v62 = vsel %vm905_vm7, %v4582_v49, %v4583_v48 }
 0x349   : > { %4288 = vmatmul.mubr.msk.bf16.vlgmr.msra.gmra.mxu0 %vm475_vm3, %v4621_v60 }
 0x406   : > { %v3893_v5 = vpop.f32.mrf.mxu1 }
 0x407   : > { %v3902_v11 = vadd.f32 %v3893_v5, %v5309_v39  ;;  %v4592_v5 = vunpack.i.l.bf16 %v4591_v34 }
 0x408   : > { %v4536_v51 = vpop.f32.mrf.mxu1 }
 0x409   : > { %v3920_v56 = vmul.f32 %v3911_v2, %v3902_v11  ;;  %v3850_v52 = vpop.f32.mrf.mxu0  ;;  %v4024_v51 = vsel %vm905_vm7, %v4597_v20, %v4598_v6 }
 0x40a   : > { %v3900_v3 = vadd.f32 %v3850_v52, %v5311_v40  ;;  %v3896_v14 = vpop.f32.mrf.mxu1 }
 0x40b   : > { %v5333_v54 = vadd.f32 %v3929_v57, %v3920_v56  ;;  %v3905_v59 = vadd.f32 %v3896_v14, %v5317_v45  ;;  %v3852_v4 = vpop.f32.mrf.mxu0 }
 0x40c   : > { %v3918_v15 = vmul.f32 %v3911_v2, %v3900_v3  ;;  %v3901_v16 = vadd.f32 %v3852_v4, %v5315_v43  ;;  %v4537_v9 = vpop.f32.mrf.mxu1 }
 0x40d   : > { %v4292_v13 = vmul.f32 -1.442695, %v5333_v54  ;;  %v3923_v39 = vmul.f32 %v3916_v12, %v3905_v59  ;;  %v3854_v21 = vpop.f32.mrf.mxu0 }
 0x40e   : > { %v3936_v24 = vadd.f32 %v3929_v57, %v3918_v15  ;;  %v3919_v22 = vmul.f32 %v3911_v2, %v3901_v16  ;;  %v3903_v19 = vadd.f32 %v3854_v21, %v5319_v47  ;;  %v4593_v2 = vunpack.i.h.bf16 %v4591_v34 }
 0x40f   : > { %4658 = vpow2.f32 %v4292_v13  ;;  %v3941_v40 = vadd.f32 %v3934_v7, %v3923_v39  ;;  %v3856_v28 = vpop.f32.mrf.mxu0 }
 0x410   : > { %v4290_v29 = vmul.f32 -1.442695, %v3936_v24  ;;  %v3937_v30 = vadd.f32 %v3929_v57, %v3919_v22  ;;  %v3921_v45 = vmul.f32 %v3916_v12, %v3903_v19  ;;  %v3904_v63 = vadd.f32 %v3856_v28, %v5321_v50 }
 0x411   : > { %v4295_v31 = vmul.f32 -1.442695, %v3941_v40  ;;  %v4020_v57 = vsel %vm905_vm7, %v4583_v48, %v4587_v44  ;;  %v4022_v4 = vsel %vm905_vm7, %v4592_v5, %v4593_v2  ;;  %v4023_v13 = vsel %vm905_vm7, %v4593_v2, %v4597_v20 }
 0x412   : > { %4660 = vpow2.f32 %v4290_v29  ;;  %v4291_v43 = vmul.f32 -1.442695, %v3937_v30  ;;  %v3939_v27 = vadd.f32 %v3934_v7, %v3921_v45  ;;  %v3922_v35 = vmul.f32 %v3916_v12, %v3904_v63 }
 0x413   : > { %4662 = vpow2.f32 %v4295_v31 }
 0x414   : > { %4664 = vpow2.f32 %v4291_v43  ;;  %v4293_v17 = vmul.f32 -1.442695, %v3939_v27  ;;  %v3940_v23 = vadd.f32 %v3934_v7, %v3922_v35 }
 0x416   : > { %4666 = vpow2.f32 %v4293_v17  ;;  %v4294_v18 = vmul.f32 -1.442695, %v3940_v23 }
 0x418   : > { %4668 = vpow2.f32 %v4294_v18 }
 0x41c   : > { %v4659_v47 = vpop.eup %4658 }
 0x41d   : > { %v3962_v25 = vadd.f32 1.0, %v4659_v47 }
 0x41f   : > { %v4661_v36 = vpop.eup %4660  ;;  %4670 = vrcp.f32 %v3962_v25 }
 0x420   : > { %v4663_v0 = vpop.eup %4662  ;;  %v3960_v26 = vadd.f32 1.0, %v4661_v36 }
 0x421   : > { %v4665_v1 = vpop.eup %4664  ;;  %v3965_v50 = vadd.f32 1.0, %v4663_v0 }
 0x422   : > { %4672 = vrcp.f32 %v3960_v26  ;;  %v3961_v32 = vadd.f32 1.0, %v4665_v1 }
 0x423   : > { %v4667_v33 = vpop.eup %4666  ;;  %4674 = vrcp.f32 %v3965_v50 }
 0x424   : > { %4676 = vrcp.f32 %v3961_v32  ;;  %v3963_v8 = vadd.f32 1.0, %v4667_v33 }
 0x425   : > { %v4669_v38 = vpop.eup %4668 }
 0x426   : > { %4678 = vrcp.f32 %v3963_v8  ;;  %v3964_v10 = vadd.f32 1.0, %v4669_v38 }
 0x428   : > { %4680 = vrcp.f32 %v3964_v10 }
 0x42c   : > { %v4671_v53 = vpop.eup %4670 }
 0x42d   : > { %v3980_v58 = vmul.f32 %v4671_v53, %v5333_v54 }
 0x42f   : > { %v4673_v60 = vpop.eup %4672  ;;  %v4033_v61 = vadd.f32 %v4021_v55, %v3980_v58 }
 0x430   : > { %v4675_v11 = vpop.eup %4674  ;;  %v3978_v12 = vmul.f32 %v4673_v60, %v3936_v24 }
 0x431   : > { %v4677_v56 = vpop.eup %4676  ;;  %v3983_v52 = vmul.f32 %v4675_v11, %v3941_v40  ;;  %4039 = vst [vmem:[%s446_s24 + $0x10] sm:$0xff] %v4033_v61 }
 0x432   : > { %v3979_v3 = vmul.f32 %v4677_v56, %v3937_v30  ;;  %v4031_v14 = vadd.f32 %v4019_v62, %v3978_v12 }
 0x433   : > { %v4679_v54 = vpop.eup %4678  ;;  %v4036_v59 = vadd.f32 %v4024_v51, %v3983_v52 }
 0x434   : > { %v3981_v15 = vmul.f32 %v4679_v54, %v3939_v27  ;;  %v4032_v16 = vadd.f32 %v4020_v57, %v3979_v3  ;;  %4037 = vst [vmem:[%s446_s24] sm:$0xff] %v4031_v14 }
 0x435   : > { %v4681_v9 = vpop.eup %4680  ;;  %4042 = vst [vmem:[%s446_s24 + $0x28] sm:$0xf] %v4036_v59 }
 0x436   : > { %v3982_v39 = vmul.f32 %v4681_v9, %v3940_v23  ;;  %4038 = vst [vmem:[%s446_s24 + $0x8] sm:$0xff] %v4032_v16  ;;  %v4034_v21 = vadd.f32 %v4022_v4, %v3981_v15 }
 0x438   : > { %v4035_v7 = vadd.f32 %v4023_v13, %v3982_v39  ;;  %4040 = vst [vmem:[%s446_s24 + $0x18] sm:$0xf] %v4034_v21 }
 0x43a   : > { %4041 = vst [vmem:[%s446_s24 + $0x20] sm:$0xf] %v4035_v7 }
 0x43b PF: > { %s21_s17 = sadd.s32 1, %s4690_s17  }
 0x43c   : > { %p18_p4 = scmp.ge.s32.totalorder %s21_s17, 4  }
 0x43e   :  { %20 = sbr.rel (!%p18_p4) target bundleno = 1 (0x1), region = 127 }

</bundles_post_ra>
